<compile_context>
chip_gen: v7x
topology: tpu7x:2x2x1
jax: 0.10.0
libtpu: 0.0.40
codegen_flags: <defaults>
</compile_context>

<pallas_src>
import functools
import math

import numpy as np
import jax
import jax.numpy as jnp
from jax import lax
from jax.experimental import pallas as pl
from jax.experimental.pallas import tpu as pltpu

EMBED_DIM = 32
NUM_HEADS = 4
FFN_DIM = 64
L_SEQ = 8      # target (decoder) sequence length
S_SEQ = 12     # memory (encoder) sequence length
BATCH = 2
LN_EPS = 1e-5


# ---------------------------------------------------------------------------
# In-kernel helpers (traced inside the Pallas kernel body)
# ---------------------------------------------------------------------------
def _layernorm(x, w, b):
    # one-pass statistics (f32): independent lane reductions
    m = jnp.mean(x, axis=-1, keepdims=True)
    m2 = jnp.mean(x * x, axis=-1, keepdims=True)
    inv = lax.rsqrt(m2 - m * m + LN_EPS)
    return (x - m) * inv * w + b


# ---------------------------------------------------------------------------
# Fused decoder-block kernel (single invocation, all batches at once)
# ---------------------------------------------------------------------------
def decoder_block_kernel(num_heads, e_dim, f_dim,
                         x_ref, mem_ref,
                         w_sa_qkv_ref, w_ca_q_ref, w_ca_kv_ref,
                         wo_sa_ref, wo_ca_ref, w1_ref, w2_ref,
                         vec_ref, msk_self_ref, msk_cross_ref,
                         o_ref):
    H = num_heads
    E = e_dim
    F = f_dim
    DH = E // H
    bf16 = jnp.bfloat16
    f32 = jnp.float32

    x = x_ref[...]                     # (T, E)  f32, T = L*N, token order (seq, batch)
    mem = mem_ref[...]                 # (S_, E) f32, S_ = S*N

    vec = vec_ref[...]                 # f32 bias / LayerNorm slab
    b_qkv = vec[0:1, :3 * E]           # q-part pre-scaled by 1/sqrt(Dh)
    b_ca_q = vec[1:2, :E]              # pre-scaled
    b_ca_kv = vec[2:3, :2 * E]
    sa_ob = vec[3:4, :E]
    ca_ob = vec[4:5, :E]
    b1 = vec[5:6, :F]
    b2 = vec[6:7, :E]
    n1w, n1b = vec[7:8, :E], vec[8:9, :E]
    n2w, n2b = vec[9:10, :E], vec[10:11, :E]
    n3w, n3b = vec[11:12, :E], vec[12:13, :E]

    mask_self = msk_self_ref[...]      # (T, T)  additive 0 / -1e30
    mask_cross = msk_cross_ref[...]    # (T, S_)

    def attend(q_flat, k_flat, v_flat, mask_bias, wo_bf16, out_b):
        """q_flat (Tq,E), k_flat/v_flat (Tk,E), f32 (softmax scale already folded)."""
        Tq = q_flat.shape[0]
        Tk = k_flat.shape[0]
        # Head layouts via 2-D transposes + free major-dim splits only:
        #   qh  : (H, Tq, Dh)  — lhs of the score matmul (contraction on its lane dim)
        #   kh_t: (H, Dh, Tk)  — rhs, contraction on sublane, lane-dense Tk output
        #   vh_t: (H, Dh, Tk)
        qh = jnp.transpose(q_flat.T.reshape(H, DH, Tq), (0, 2, 1))
        kh_t = k_flat.T.reshape(H, DH, Tk)
        vh_t = v_flat.T.reshape(H, DH, Tk)

        s = jnp.einsum('hqd,hdk->hqk', qh.astype(bf16), kh_t.astype(bf16),
                       preferred_element_type=f32)                     # (H, Tq, Tk)
        s = s + mask_bias[None]                                        # kill cross-batch
        s = s - jnp.max(s, axis=-1, keepdims=True)
        p = jnp.exp(s)
        p = p * pl.reciprocal(jnp.sum(p, axis=-1, keepdims=True), approx=True)

        # o_cm[h,d,q] = sum_k v[h,d,k] * p[h,q,k]     -> channel-major head output
        o_cm = jnp.einsum('hdk,hqk->hdq', vh_t.astype(bf16), p.astype(bf16),
                          preferred_element_type=f32)                  # (H, Dh, Tq)
        o_flat = o_cm.reshape(E, Tq).T                                 # (Tq, E) = concat heads
        # head concat + out-proj as ONE matmul (cross-head sum inside the MXU)
        return jnp.dot(o_flat.astype(bf16), wo_bf16,
                       preferred_element_type=f32) + out_b

    # --- self attention: fused (T,E)x(E,3E) projection ---
    qkv = jnp.dot(x.astype(bf16), w_sa_qkv_ref[...],
                  preferred_element_type=f32) + b_qkv                  # (T, 3E)
    sa = attend(qkv[:, :E], qkv[:, E:2 * E], qkv[:, 2 * E:],
                mask_self, wo_sa_ref[...], sa_ob)
    x = _layernorm(x + sa, n1w, n1b)

    # --- cross attention: (T,E)x(E,E) for Q, (S,E)x(E,2E) for K/V ---
    q_c = jnp.dot(x.astype(bf16), w_ca_q_ref[...],
                  preferred_element_type=f32) + b_ca_q                 # (T, E)
    kv_c = jnp.dot(mem.astype(bf16), w_ca_kv_ref[...],
                   preferred_element_type=f32) + b_ca_kv               # (S_, 2E)
    ca = attend(q_c, kv_c[:, :E], kv_c[:, E:],
                mask_cross, wo_ca_ref[...], ca_ob)
    x = _layernorm(x + ca, n2w, n2b)

    # --- feed-forward + residual + norm3 ---
    h = jnp.maximum(jnp.dot(x.astype(bf16), w1_ref[...],
                            preferred_element_type=f32) + b1, 0.0)     # (T, F)
    ffn = jnp.dot(h.astype(bf16), w2_ref[...],
                  preferred_element_type=f32) + b2                     # (T, E)
    x = _layernorm(x + ffn, n3w, n3b)

    o_ref[...] = x.astype(o_ref.dtype)


# ---------------------------------------------------------------------------
# Wrapper: parameter packing (one-time, plain JAX) + pallas_call
# ---------------------------------------------------------------------------
def pack_params(params, num_heads=NUM_HEADS):
    (sa_w, sa_b, sa_ow, sa_ob,
     ca_w, ca_b, ca_ow, ca_ob,
     w1, b1, w2, b2,
     n1w, n1b, n2w, n2b, n3w, n3b) = params
    E = sa_ow.shape[0]
    DH = E // num_heads
    F = w1.shape[0]
    scale = 1.0 / math.sqrt(DH)
    bf16 = jnp.bfloat16

    # fused self-attn in-proj, pre-transposed (contraction dim leading), scale folded into Q
    w_sa_qkv = jnp.concatenate(
        [sa_w[:E].T * scale, sa_w[E:2 * E].T, sa_w[2 * E:].T], axis=1)      # (E, 3E)
    b_sa_qkv = jnp.concatenate([sa_b[:E] * scale, sa_b[E:]])                # (3E,)
    # cross-attn: Q from x, K/V from memory
    w_ca_q = ca_w[:E].T * scale                                             # (E, E)
    b_ca_q = ca_b[:E] * scale                                               # (E,)
    w_ca_kv = ca_w[E:].T                                                    # (E, 2E)
    b_ca_kv = ca_b[E:]                                                      # (2E,)
    # out-projections and FFN, pre-transposed
    wo_sa = sa_ow.T
    wo_ca = ca_ow.T
    w1t = w1.T                                                              # (E, F)
    w2t = w2.T                                                              # (F, E)

    width = max(3 * E, F)

    def row(v):
        return jnp.pad(v, (0, width - v.shape[0]))[None, :]

    rows = [row(b_sa_qkv), row(b_ca_q), row(b_ca_kv), row(sa_ob), row(ca_ob),
            row(b1), row(b2),
            row(n1w), row(n1b), row(n2w), row(n2b), row(n3w), row(n3b)]
    pad_rows = (-len(rows)) % 8
    vec = jnp.concatenate(
        rows + [jnp.zeros((pad_rows, width), jnp.float32)], axis=0).astype(jnp.float32)

    return (w_sa_qkv.astype(bf16), w_ca_q.astype(bf16), w_ca_kv.astype(bf16),
            wo_sa.astype(bf16), wo_ca.astype(bf16),
            w1t.astype(bf16), w2t.astype(bf16), vec)


def _batch_mask_bias(t_q, t_k, n_batch):
    # token order is (seq, batch) -> batch id = token_id % n_batch; built at trace time
    rows = np.arange(t_q)[:, None] % n_batch
    cols = np.arange(t_k)[None, :] % n_batch
    return jnp.asarray(np.where(rows == cols, 0.0, -1e30).astype(np.float32))


def transformer_decoder_block(x_lne, mem_sne, params, num_heads=NUM_HEADS):
    """x_lne: (L, N, E), mem_sne: (S, N, E) — PyTorch seq-first convention."""
    L, N, E = x_lne.shape
    S = mem_sne.shape[0]
    F = params[8].shape[0]   # w1: (F, E)
    T = L * N
    S_ = S * N

    # free row-major reshapes (no transposes): token order is (seq, batch)
    x2 = x_lne.reshape(T, E).astype(jnp.float32)
    mem2 = mem_sne.reshape(S_, E).astype(jnp.float32)

    packed = pack_params(params, num_heads)
    mask_self = _batch_mask_bias(T, T, N)
    mask_cross = _batch_mask_bias(T, S_, N)

    kernel = functools.partial(decoder_block_kernel, num_heads, E, F)

    out2 = pl.pallas_call(
        kernel,
        out_shape=jax.ShapeDtypeStruct((T, E), jnp.float32),
        in_specs=[pl.BlockSpec(memory_space=pltpu.MemorySpace.VMEM)] * 12,
        out_specs=pl.BlockSpec(memory_space=pltpu.MemorySpace.VMEM),
    )(x2, mem2, *packed, mask_self, mask_cross)

    return out2.reshape(L, N, E)


# ---------------------------------------------------------------------------
# Pure-JAX reference (mirrors the PyTorch forward, eval-mode dropout, f32)
# ---------------------------------------------------------------------------
def reference(x_lne, mem_sne, params, num_heads=NUM_HEADS):
    (sa_w, sa_b, sa_ow, sa_ob,
     ca_w, ca_b, ca_ow, ca_ob,
     w1, b1, w2, b2,
     n1w, n1b, n2w, n2b, n3w, n3b) = params

    def ln(x, w, b):
        m = jnp.mean(x, -1, keepdims=True)
        v = jnp.mean((x - m) ** 2, -1, keepdims=True)
        return (x - m) / jnp.sqrt(v + LN_EPS) * w + b

    def mha(q_in, kv_in, in_w, in_b, out_w, out_b):
        E = q_in.shape[-1]
        Dh = E // num_heads
        q = q_in @ in_w[:E].T + in_b[:E]
        k = kv_in @ in_w[E:2 * E].T + in_b[E:2 * E]
        v = kv_in @ in_w[2 * E:].T + in_b[2 * E:]
        outs = []
        for h in range(num_heads):
            qh = q[..., h * Dh:(h + 1) * Dh] / math.sqrt(Dh)
            kh = k[..., h * Dh:(h + 1) * Dh]
            vh = v[..., h * Dh:(h + 1) * Dh]
            s = jnp.einsum("bqd,bkd->bqk", qh, kh)
            p = jax.nn.softmax(s, axis=-1)
            outs.append(jnp.einsum("bqk,bkd->bqd", p, vh))
        o = jnp.concatenate(outs, axis=-1)
        return o @ out_w.T + out_b

    x = jnp.transpose(x_lne, (1, 0, 2))      # (N, L, E)
    mem = jnp.transpose(mem_sne, (1, 0, 2))  # (N, S, E)

    x = ln(x + mha(x, x, sa_w, sa_b, sa_ow, sa_ob), n1w, n1b)
    x = ln(x + mha(x, mem, ca_w, ca_b, ca_ow, ca_ob), n2w, n2b)
    h = jnp.maximum(x @ w1.T + b1, 0.0)
    x = ln(x + (h @ w2.T + b2), n3w, n3b)
    return jnp.transpose(x, (1, 0, 2))


# ---------------------------------------------------------------------------
def make_params(key, embed_dim=EMBED_DIM, ffn_dim=FFN_DIM):
    ks = jax.random.split(key, 12)
    std = 0.05
    sa_w = jax.random.normal(ks[0], (3 * embed_dim, embed_dim), jnp.float32) * std
    sa_b = jax.random.normal(ks[1], (3 * embed_dim,), jnp.float32) * std
    sa_ow = jax.random.normal(ks[2], (embed_dim, embed_dim), jnp.float32) * std
    sa_ob = jax.random.normal(ks[3], (embed_dim,), jnp.float32) * std
    ca_w = jax.random.normal(ks[4], (3 * embed_dim, embed_dim), jnp.float32) * std
    ca_b = jax.random.normal(ks[5], (3 * embed_dim,), jnp.float32) * std
    ca_ow = jax.random.normal(ks[6], (embed_dim, embed_dim), jnp.float32) * std
    ca_ob = jax.random.normal(ks[7], (embed_dim,), jnp.float32) * std
    w1 = jax.random.normal(ks[8], (ffn_dim, embed_dim), jnp.float32) * std
    b1 = jax.random.normal(ks[9], (ffn_dim,), jnp.float32) * std
    w2 = jax.random.normal(ks[10], (embed_dim, ffn_dim), jnp.float32) * std
    b2 = jax.random.normal(ks[11], (embed_dim,), jnp.float32) * std
    n1w = jnp.ones((embed_dim,), jnp.float32)
    n1b = jnp.zeros((embed_dim,), jnp.float32)
    n2w = jnp.ones((embed_dim,), jnp.float32) * 1.1
    n2b = jnp.zeros((embed_dim,), jnp.float32) + 0.01
    n3w = jnp.ones((embed_dim,), jnp.float32) * 0.9
    n3b = jnp.zeros((embed_dim,), jnp.float32) - 0.01
    return (sa_w, sa_b, sa_ow, sa_ob,
            ca_w, ca_b, ca_ow, ca_ob,
            w1, b1, w2, b2,
            n1w, n1b, n2w, n2b, n3w, n3b)


if __name__ == "__main__":
    key = jax.random.PRNGKey(0)
    kx, km, kp = jax.random.split(key, 3)

    x = jax.random.normal(kx, (L_SEQ, BATCH, EMBED_DIM), jnp.float32)       # (L, N, E)
    memory = jax.random.normal(km, (S_SEQ, BATCH, EMBED_DIM), jnp.float32)  # (S, N, E)
    params = make_params(kp)

    fwd = jax.jit(functools.partial(transformer_decoder_block, num_heads=NUM_HEADS))
    out = jax.block_until_ready(fwd(x, memory, params))

    ref = reference(x, memory, params)
    assert out.shape == (L_SEQ, BATCH, EMBED_DIM)
    max_err = float(jnp.max(jnp.abs(out - ref)))
    # tolerance reflects bf16 MXU operands (f32 accumulate) + approx softmax reciprocal
    assert jnp.allclose(out, ref, rtol=1e-2, atol=1e-2), max_err

    print("KERNEL_OK")
</pallas_src>

<mosaic_0001>
module attributes {stable_mosaic.version = 11 : i64} {
  func.func @decoder_block_kernel(%arg0: memref<16x32xf32, #tpu.memory_space<vmem>>, %arg1: memref<24x32xf32, #tpu.memory_space<vmem>>, %arg2: memref<32x96xbf16, #tpu.memory_space<vmem>>, %arg3: memref<32x32xbf16, #tpu.memory_space<vmem>>, %arg4: memref<32x64xbf16, #tpu.memory_space<vmem>>, %arg5: memref<32x32xbf16, #tpu.memory_space<vmem>>, %arg6: memref<32x32xbf16, #tpu.memory_space<vmem>>, %arg7: memref<32x64xbf16, #tpu.memory_space<vmem>>, %arg8: memref<64x32xbf16, #tpu.memory_space<vmem>>, %arg9: memref<16x96xf32, #tpu.memory_space<vmem>>, %arg10: memref<16x16xf32, #tpu.memory_space<vmem>>, %arg11: memref<16x24xf32, #tpu.memory_space<vmem>>, %arg12: memref<16x32xf32, #tpu.memory_space<vmem>>) attributes {dimension_semantics = [], scalar_prefetch = 0 : i64, scratch_operands = 0 : i64, tpu.core_type = #tpu.core_type<tc>} {
    %c0 = arith.constant 0 : index
    %c0_0 = arith.constant 0 : index
    %0 = vector.load %arg0[%c0, %c0_0] : memref<16x32xf32, #tpu.memory_space<vmem>>, vector<16x32xf32>
    %c0_1 = arith.constant 0 : index
    %c0_2 = arith.constant 0 : index
    %1 = vector.load %arg1[%c0_1, %c0_2] : memref<24x32xf32, #tpu.memory_space<vmem>>, vector<24x32xf32>
    %c0_3 = arith.constant 0 : index
    %c0_4 = arith.constant 0 : index
    %2 = vector.load %arg9[%c0_3, %c0_4] : memref<16x96xf32, #tpu.memory_space<vmem>>, vector<16x96xf32>
    %3 = vector.extract_strided_slice %2 {offsets = [0, 0], sizes = [1, 96], strides = [1, 1]} : vector<16x96xf32> to vector<1x96xf32>
    %4 = vector.extract_strided_slice %2 {offsets = [1, 0], sizes = [1, 32], strides = [1, 1]} : vector<16x96xf32> to vector<1x32xf32>
    %5 = vector.extract_strided_slice %2 {offsets = [2, 0], sizes = [1, 64], strides = [1, 1]} : vector<16x96xf32> to vector<1x64xf32>
    %6 = vector.extract_strided_slice %2 {offsets = [3, 0], sizes = [1, 32], strides = [1, 1]} : vector<16x96xf32> to vector<1x32xf32>
    %7 = vector.extract_strided_slice %2 {offsets = [4, 0], sizes = [1, 32], strides = [1, 1]} : vector<16x96xf32> to vector<1x32xf32>
    %8 = vector.extract_strided_slice %2 {offsets = [5, 0], sizes = [1, 64], strides = [1, 1]} : vector<16x96xf32> to vector<1x64xf32>
    %9 = vector.extract_strided_slice %2 {offsets = [6, 0], sizes = [1, 32], strides = [1, 1]} : vector<16x96xf32> to vector<1x32xf32>
    %10 = vector.extract_strided_slice %2 {offsets = [7, 0], sizes = [1, 32], strides = [1, 1]} : vector<16x96xf32> to vector<1x32xf32>
    %11 = vector.extract_strided_slice %2 {offsets = [8, 0], sizes = [1, 32], strides = [1, 1]} : vector<16x96xf32> to vector<1x32xf32>
    %12 = vector.extract_strided_slice %2 {offsets = [9, 0], sizes = [1, 32], strides = [1, 1]} : vector<16x96xf32> to vector<1x32xf32>
    %13 = vector.extract_strided_slice %2 {offsets = [10, 0], sizes = [1, 32], strides = [1, 1]} : vector<16x96xf32> to vector<1x32xf32>
    %14 = vector.extract_strided_slice %2 {offsets = [11, 0], sizes = [1, 32], strides = [1, 1]} : vector<16x96xf32> to vector<1x32xf32>
    %15 = vector.extract_strided_slice %2 {offsets = [12, 0], sizes = [1, 32], strides = [1, 1]} : vector<16x96xf32> to vector<1x32xf32>
    %c0_5 = arith.constant 0 : index
    %c0_6 = arith.constant 0 : index
    %16 = vector.load %arg10[%c0_5, %c0_6] : memref<16x16xf32, #tpu.memory_space<vmem>>, vector<16x16xf32>
    %c0_7 = arith.constant 0 : index
    %c0_8 = arith.constant 0 : index
    %17 = vector.load %arg11[%c0_7, %c0_8] : memref<16x24xf32, #tpu.memory_space<vmem>>, vector<16x24xf32>
    %18 = arith.truncf %0 : vector<16x32xf32> to vector<16x32xbf16>
    %c0_9 = arith.constant 0 : index
    %c0_10 = arith.constant 0 : index
    %19 = vector.load %arg2[%c0_9, %c0_10] : memref<32x96xbf16, #tpu.memory_space<vmem>>, vector<32x96xbf16>
    %cst = arith.constant dense<0.000000e+00> : vector<16x96xf32>
    %20 = tpu.matmul %18, %19, %cst {dimension_numbers = #tpu.dot_dimension_numbers<[1], [0], [0], [1], [0, 0, 1, 1], [], []>} : vector<16x32xbf16>, vector<32x96xbf16>, vector<16x96xf32> -> vector<16x96xf32>
    %21 = vector.broadcast %3 : vector<1x96xf32> to vector<16x96xf32>
    %22 = arith.addf %20, %21 : vector<16x96xf32>
    %23 = vector.extract_strided_slice %22 {offsets = [0, 0], sizes = [16, 32], strides = [1, 1]} : vector<16x96xf32> to vector<16x32xf32>
    %24 = vector.extract_strided_slice %22 {offsets = [0, 32], sizes = [16, 32], strides = [1, 1]} : vector<16x96xf32> to vector<16x32xf32>
    %25 = vector.extract_strided_slice %22 {offsets = [0, 64], sizes = [16, 32], strides = [1, 1]} : vector<16x96xf32> to vector<16x32xf32>
    %c0_11 = arith.constant 0 : index
    %c0_12 = arith.constant 0 : index
    %26 = vector.load %arg5[%c0_11, %c0_12] : memref<32x32xbf16, #tpu.memory_space<vmem>>, vector<32x32xbf16>
    %27 = tpu.transpose %23, [1, 0] : vector<16x32xf32> -> vector<32x16xf32>
    %28 = vector.shape_cast %27 : vector<32x16xf32> to vector<4x8x16xf32>
    %29 = tpu.transpose %28, [0, 2, 1] : vector<4x8x16xf32> -> vector<4x16x8xf32>
    %30 = tpu.transpose %24, [1, 0] : vector<16x32xf32> -> vector<32x16xf32>
    %31 = vector.shape_cast %30 : vector<32x16xf32> to vector<4x8x16xf32>
    %32 = tpu.transpose %25, [1, 0] : vector<16x32xf32> -> vector<32x16xf32>
    %33 = vector.shape_cast %32 : vector<32x16xf32> to vector<4x8x16xf32>
    %34 = arith.truncf %29 : vector<4x16x8xf32> to vector<4x16x8xbf16>
    %35 = arith.truncf %31 : vector<4x8x16xf32> to vector<4x8x16xbf16>
    "tpu.trace_start"() <{level = 10 : i32, message = "hqd,hdk->hqk"}> : () -> ()
    %cst_13 = arith.constant dense<0.000000e+00> : vector<4x16x16xf32>
    %36 = tpu.matmul %34, %35, %cst_13 {dimension_numbers = #tpu.dot_dimension_numbers<[2], [1], [1], [2], [0, 0, 0, 1, 1, 2], [0], [0]>} : vector<4x16x8xbf16>, vector<4x8x16xbf16>, vector<4x16x16xf32> -> vector<4x16x16xf32>
    "tpu.trace_stop"() : () -> ()
    %37 = vector.shape_cast %16 : vector<16x16xf32> to vector<1x16x16xf32>
    %38 = vector.broadcast %37 : vector<1x16x16xf32> to vector<4x16x16xf32>
    %39 = arith.addf %36, %38 : vector<4x16x16xf32>
    %cst_14 = arith.constant dense<0xFF800000> : vector<4x16xf32>
    %40 = vector.multi_reduction <maximumf>, %39, %cst_14 [2] : vector<4x16x16xf32> to vector<4x16xf32>
    %41 = vector.shape_cast %40 : vector<4x16xf32> to vector<4x16x1xf32>
    %42 = vector.broadcast %41 : vector<4x16x1xf32> to vector<4x16x16xf32>
    %43 = arith.subf %39, %42 : vector<4x16x16xf32>
    %44 = math.exp %43 : vector<4x16x16xf32>
    %cst_15 = arith.constant dense<0.000000e+00> : vector<4x16xf32>
    %45 = vector.multi_reduction <add>, %44, %cst_15 [2] : vector<4x16x16xf32> to vector<4x16xf32>
    %46 = vector.shape_cast %45 : vector<4x16xf32> to vector<4x16x1xf32>
    %47 = tpu.reciprocal %46 {approx = true} : vector<4x16x1xf32> -> vector<4x16x1xf32>
    %48 = vector.broadcast %47 : vector<4x16x1xf32> to vector<4x16x16xf32>
    %49 = arith.mulf %44, %48 : vector<4x16x16xf32>
    %50 = arith.truncf %33 : vector<4x8x16xf32> to vector<4x8x16xbf16>
    %51 = arith.truncf %49 : vector<4x16x16xf32> to vector<4x16x16xbf16>
    "tpu.trace_start"() <{level = 10 : i32, message = "hdk,hqk->hdq"}> : () -> ()
    %cst_16 = arith.constant dense<0.000000e+00> : vector<4x8x16xf32>
    %52 = tpu.matmul %50, %51, %cst_16 {dimension_numbers = #tpu.dot_dimension_numbers<[2], [2], [1], [1], [0, 0, 0, 1, 1, 1], [0], [0]>} : vector<4x8x16xbf16>, vector<4x16x16xbf16>, vector<4x8x16xf32> -> vector<4x8x16xf32>
    "tpu.trace_stop"() : () -> ()
    %53 = vector.shape_cast %52 : vector<4x8x16xf32> to vector<32x16xf32>
    %54 = tpu.transpose %53, [1, 0] : vector<32x16xf32> -> vector<16x32xf32>
    %55 = arith.truncf %54 : vector<16x32xf32> to vector<16x32xbf16>
    %cst_17 = arith.constant dense<0.000000e+00> : vector<16x32xf32>
    %56 = tpu.matmul %55, %26, %cst_17 {dimension_numbers = #tpu.dot_dimension_numbers<[1], [0], [0], [1], [0, 0, 1, 1], [], []>} : vector<16x32xbf16>, vector<32x32xbf16>, vector<16x32xf32> -> vector<16x32xf32>
    %57 = vector.broadcast %6 : vector<1x32xf32> to vector<16x32xf32>
    %58 = arith.addf %56, %57 : vector<16x32xf32>
    %59 = arith.addf %0, %58 : vector<16x32xf32>
    %cst_18 = arith.constant dense<0.000000e+00> : vector<16xf32>
    %60 = vector.multi_reduction <add>, %59, %cst_18 [1] : vector<16x32xf32> to vector<16xf32>
    %61 = vector.shape_cast %60 : vector<16xf32> to vector<16x1xf32>
    %cst_19 = arith.constant 3.200000e+01 : f32
    %62 = vector.broadcast %cst_19 : f32 to vector<16x1xf32>
    %63 = arith.divf %61, %62 : vector<16x1xf32>
    %64 = arith.mulf %59, %59 : vector<16x32xf32>
    %cst_20 = arith.constant dense<0.000000e+00> : vector<16xf32>
    %65 = vector.multi_reduction <add>, %64, %cst_20 [1] : vector<16x32xf32> to vector<16xf32>
    %66 = vector.shape_cast %65 : vector<16xf32> to vector<16x1xf32>
    %cst_21 = arith.constant 3.200000e+01 : f32
    %67 = vector.broadcast %cst_21 : f32 to vector<16x1xf32>
    %68 = arith.divf %66, %67 : vector<16x1xf32>
    %69 = arith.mulf %63, %63 : vector<16x1xf32>
    %70 = arith.subf %68, %69 : vector<16x1xf32>
    %cst_22 = arith.constant 9.99999974E-6 : f32
    %71 = vector.broadcast %cst_22 : f32 to vector<16x1xf32>
    %72 = arith.addf %70, %71 : vector<16x1xf32>
    %73 = math.rsqrt %72 : vector<16x1xf32>
    %74 = vector.broadcast %63 : vector<16x1xf32> to vector<16x32xf32>
    %75 = arith.subf %59, %74 : vector<16x32xf32>
    %76 = vector.broadcast %73 : vector<16x1xf32> to vector<16x32xf32>
    %77 = arith.mulf %75, %76 : vector<16x32xf32>
    %78 = vector.broadcast %10 : vector<1x32xf32> to vector<16x32xf32>
    %79 = arith.mulf %77, %78 : vector<16x32xf32>
    %80 = vector.broadcast %11 : vector<1x32xf32> to vector<16x32xf32>
    %81 = arith.addf %79, %80 : vector<16x32xf32>
    %82 = arith.truncf %81 : vector<16x32xf32> to vector<16x32xbf16>
    %c0_23 = arith.constant 0 : index
    %c0_24 = arith.constant 0 : index
    %83 = vector.load %arg3[%c0_23, %c0_24] : memref<32x32xbf16, #tpu.memory_space<vmem>>, vector<32x32xbf16>
    %cst_25 = arith.constant dense<0.000000e+00> : vector<16x32xf32>
    %84 = tpu.matmul %82, %83, %cst_25 {dimension_numbers = #tpu.dot_dimension_numbers<[1], [0], [0], [1], [0, 0, 1, 1], [], []>} : vector<16x32xbf16>, vector<32x32xbf16>, vector<16x32xf32> -> vector<16x32xf32>
    %85 = vector.broadcast %4 : vector<1x32xf32> to vector<16x32xf32>
    %86 = arith.addf %84, %85 : vector<16x32xf32>
    %87 = arith.truncf %1 : vector<24x32xf32> to vector<24x32xbf16>
    %c0_26 = arith.constant 0 : index
    %c0_27 = arith.constant 0 : index
    %88 = vector.load %arg4[%c0_26, %c0_27] : memref<32x64xbf16, #tpu.memory_space<vmem>>, vector<32x64xbf16>
    %cst_28 = arith.constant dense<0.000000e+00> : vector<24x64xf32>
    %89 = tpu.matmul %87, %88, %cst_28 {dimension_numbers = #tpu.dot_dimension_numbers<[1], [0], [0], [1], [0, 0, 1, 1], [], []>} : vector<24x32xbf16>, vector<32x64xbf16>, vector<24x64xf32> -> vector<24x64xf32>
    %90 = vector.broadcast %5 : vector<1x64xf32> to vector<24x64xf32>
    %91 = arith.addf %89, %90 : vector<24x64xf32>
    %92 = vector.extract_strided_slice %91 {offsets = [0, 0], sizes = [24, 32], strides = [1, 1]} : vector<24x64xf32> to vector<24x32xf32>
    %93 = vector.extract_strided_slice %91 {offsets = [0, 32], sizes = [24, 32], strides = [1, 1]} : vector<24x64xf32> to vector<24x32xf32>
    %c0_29 = arith.constant 0 : index
    %c0_30 = arith.constant 0 : index
    %94 = vector.load %arg6[%c0_29, %c0_30] : memref<32x32xbf16, #tpu.memory_space<vmem>>, vector<32x32xbf16>
    %95 = tpu.transpose %86, [1, 0] : vector<16x32xf32> -> vector<32x16xf32>
    %96 = vector.shape_cast %95 : vector<32x16xf32> to vector<4x8x16xf32>
    %97 = tpu.transpose %96, [0, 2, 1] : vector<4x8x16xf32> -> vector<4x16x8xf32>
    %98 = tpu.transpose %92, [1, 0] : vector<24x32xf32> -> vector<32x24xf32>
    %99 = vector.shape_cast %98 : vector<32x24xf32> to vector<4x8x24xf32>
    %100 = tpu.transpose %93, [1, 0] : vector<24x32xf32> -> vector<32x24xf32>
    %101 = vector.shape_cast %100 : vector<32x24xf32> to vector<4x8x24xf32>
    %102 = arith.truncf %97 : vector<4x16x8xf32> to vector<4x16x8xbf16>
    %103 = arith.truncf %99 : vector<4x8x24xf32> to vector<4x8x24xbf16>
    "tpu.trace_start"() <{level = 10 : i32, message = "hqd,hdk->hqk"}> : () -> ()
    %cst_31 = arith.constant dense<0.000000e+00> : vector<4x16x24xf32>
    %104 = tpu.matmul %102, %103, %cst_31 {dimension_numbers = #tpu.dot_dimension_numbers<[2], [1], [1], [2], [0, 0, 0, 1, 1, 2], [0], [0]>} : vector<4x16x8xbf16>, vector<4x8x24xbf16>, vector<4x16x24xf32> -> vector<4x16x24xf32>
    "tpu.trace_stop"() : () -> ()
    %105 = vector.shape_cast %17 : vector<16x24xf32> to vector<1x16x24xf32>
    %106 = vector.broadcast %105 : vector<1x16x24xf32> to vector<4x16x24xf32>
    %107 = arith.addf %104, %106 : vector<4x16x24xf32>
    %cst_32 = arith.constant dense<0xFF800000> : vector<4x16xf32>
    %108 = vector.multi_reduction <maximumf>, %107, %cst_32 [2] : vector<4x16x24xf32> to vector<4x16xf32>
    %109 = vector.shape_cast %108 : vector<4x16xf32> to vector<4x16x1xf32>
    %110 = vector.broadcast %109 : vector<4x16x1xf32> to vector<4x16x24xf32>
    %111 = arith.subf %107, %110 : vector<4x16x24xf32>
    %112 = math.exp %111 : vector<4x16x24xf32>
    %cst_33 = arith.constant dense<0.000000e+00> : vector<4x16xf32>
    %113 = vector.multi_reduction <add>, %112, %cst_33 [2] : vector<4x16x24xf32> to vector<4x16xf32>
    %114 = vector.shape_cast %113 : vector<4x16xf32> to vector<4x16x1xf32>
    %115 = tpu.reciprocal %114 {approx = true} : vector<4x16x1xf32> -> vector<4x16x1xf32>
    %116 = vector.broadcast %115 : vector<4x16x1xf32> to vector<4x16x24xf32>
    %117 = arith.mulf %112, %116 : vector<4x16x24xf32>
    %118 = arith.truncf %101 : vector<4x8x24xf32> to vector<4x8x24xbf16>
    %119 = arith.truncf %117 : vector<4x16x24xf32> to vector<4x16x24xbf16>
    "tpu.trace_start"() <{level = 10 : i32, message = "hdk,hqk->hdq"}> : () -> ()
    %cst_34 = arith.constant dense<0.000000e+00> : vector<4x8x16xf32>
    %120 = tpu.matmul %118, %119, %cst_34 {dimension_numbers = #tpu.dot_dimension_numbers<[2], [2], [1], [1], [0, 0, 0, 1, 1, 1], [0], [0]>} : vector<4x8x24xbf16>, vector<4x16x24xbf16>, vector<4x8x16xf32> -> vector<4x8x16xf32>
    "tpu.trace_stop"() : () -> ()
    %121 = vector.shape_cast %120 : vector<4x8x16xf32> to vector<32x16xf32>
    %122 = tpu.transpose %121, [1, 0] : vector<32x16xf32> -> vector<16x32xf32>
    %123 = arith.truncf %122 : vector<16x32xf32> to vector<16x32xbf16>
    %cst_35 = arith.constant dense<0.000000e+00> : vector<16x32xf32>
    %124 = tpu.matmul %123, %94, %cst_35 {dimension_numbers = #tpu.dot_dimension_numbers<[1], [0], [0], [1], [0, 0, 1, 1], [], []>} : vector<16x32xbf16>, vector<32x32xbf16>, vector<16x32xf32> -> vector<16x32xf32>
    %125 = vector.broadcast %7 : vector<1x32xf32> to vector<16x32xf32>
    %126 = arith.addf %124, %125 : vector<16x32xf32>
    %127 = arith.addf %81, %126 : vector<16x32xf32>
    %cst_36 = arith.constant dense<0.000000e+00> : vector<16xf32>
    %128 = vector.multi_reduction <add>, %127, %cst_36 [1] : vector<16x32xf32> to vector<16xf32>
    %129 = vector.shape_cast %128 : vector<16xf32> to vector<16x1xf32>
    %cst_37 = arith.constant 3.200000e+01 : f32
    %130 = vector.broadcast %cst_37 : f32 to vector<16x1xf32>
    %131 = arith.divf %129, %130 : vector<16x1xf32>
    %132 = arith.mulf %127, %127 : vector<16x32xf32>
    %cst_38 = arith.constant dense<0.000000e+00> : vector<16xf32>
    %133 = vector.multi_reduction <add>, %132, %cst_38 [1] : vector<16x32xf32> to vector<16xf32>
    %134 = vector.shape_cast %133 : vector<16xf32> to vector<16x1xf32>
    %cst_39 = arith.constant 3.200000e+01 : f32
    %135 = vector.broadcast %cst_39 : f32 to vector<16x1xf32>
    %136 = arith.divf %134, %135 : vector<16x1xf32>
    %137 = arith.mulf %131, %131 : vector<16x1xf32>
    %138 = arith.subf %136, %137 : vector<16x1xf32>
    %cst_40 = arith.constant 9.99999974E-6 : f32
    %139 = vector.broadcast %cst_40 : f32 to vector<16x1xf32>
    %140 = arith.addf %138, %139 : vector<16x1xf32>
    %141 = math.rsqrt %140 : vector<16x1xf32>
    %142 = vector.broadcast %131 : vector<16x1xf32> to vector<16x32xf32>
    %143 = arith.subf %127, %142 : vector<16x32xf32>
    %144 = vector.broadcast %141 : vector<16x1xf32> to vector<16x32xf32>
    %145 = arith.mulf %143, %144 : vector<16x32xf32>
    %146 = vector.broadcast %12 : vector<1x32xf32> to vector<16x32xf32>
    %147 = arith.mulf %145, %146 : vector<16x32xf32>
    %148 = vector.broadcast %13 : vector<1x32xf32> to vector<16x32xf32>
    %149 = arith.addf %147, %148 : vector<16x32xf32>
    %150 = arith.truncf %149 : vector<16x32xf32> to vector<16x32xbf16>
    %c0_41 = arith.constant 0 : index
    %c0_42 = arith.constant 0 : index
    %151 = vector.load %arg7[%c0_41, %c0_42] : memref<32x64xbf16, #tpu.memory_space<vmem>>, vector<32x64xbf16>
    %cst_43 = arith.constant dense<0.000000e+00> : vector<16x64xf32>
    %152 = tpu.matmul %150, %151, %cst_43 {dimension_numbers = #tpu.dot_dimension_numbers<[1], [0], [0], [1], [0, 0, 1, 1], [], []>} : vector<16x32xbf16>, vector<32x64xbf16>, vector<16x64xf32> -> vector<16x64xf32>
    %153 = vector.broadcast %8 : vector<1x64xf32> to vector<16x64xf32>
    %154 = arith.addf %152, %153 : vector<16x64xf32>
    %cst_44 = arith.constant 0.000000e+00 : f32
    %155 = vector.broadcast %cst_44 : f32 to vector<16x64xf32>
    %156 = arith.maximumf %154, %155 : vector<16x64xf32>
    %157 = arith.truncf %156 : vector<16x64xf32> to vector<16x64xbf16>
    %c0_45 = arith.constant 0 : index
    %c0_46 = arith.constant 0 : index
    %158 = vector.load %arg8[%c0_45, %c0_46] : memref<64x32xbf16, #tpu.memory_space<vmem>>, vector<64x32xbf16>
    %cst_47 = arith.constant dense<0.000000e+00> : vector<16x32xf32>
    %159 = tpu.matmul %157, %158, %cst_47 {dimension_numbers = #tpu.dot_dimension_numbers<[1], [0], [0], [1], [0, 0, 1, 1], [], []>} : vector<16x64xbf16>, vector<64x32xbf16>, vector<16x32xf32> -> vector<16x32xf32>
    %160 = vector.broadcast %9 : vector<1x32xf32> to vector<16x32xf32>
    %161 = arith.addf %159, %160 : vector<16x32xf32>
    %162 = arith.addf %149, %161 : vector<16x32xf32>
    %cst_48 = arith.constant dense<0.000000e+00> : vector<16xf32>
    %163 = vector.multi_reduction <add>, %162, %cst_48 [1] : vector<16x32xf32> to vector<16xf32>
    %164 = vector.shape_cast %163 : vector<16xf32> to vector<16x1xf32>
    %cst_49 = arith.constant 3.200000e+01 : f32
    %165 = vector.broadcast %cst_49 : f32 to vector<16x1xf32>
    %166 = arith.divf %164, %165 : vector<16x1xf32>
    %167 = arith.mulf %162, %162 : vector<16x32xf32>
    %cst_50 = arith.constant dense<0.000000e+00> : vector<16xf32>
    %168 = vector.multi_reduction <add>, %167, %cst_50 [1] : vector<16x32xf32> to vector<16xf32>
    %169 = vector.shape_cast %168 : vector<16xf32> to vector<16x1xf32>
    %cst_51 = arith.constant 3.200000e+01 : f32
    %170 = vector.broadcast %cst_51 : f32 to vector<16x1xf32>
    %171 = arith.divf %169, %170 : vector<16x1xf32>
    %172 = arith.mulf %166, %166 : vector<16x1xf32>
    %173 = arith.subf %171, %172 : vector<16x1xf32>
    %cst_52 = arith.constant 9.99999974E-6 : f32
    %174 = vector.broadcast %cst_52 : f32 to vector<16x1xf32>
    %175 = arith.addf %173, %174 : vector<16x1xf32>
    %176 = math.rsqrt %175 : vector<16x1xf32>
    %177 = vector.broadcast %166 : vector<16x1xf32> to vector<16x32xf32>
    %178 = arith.subf %162, %177 : vector<16x32xf32>
    %179 = vector.broadcast %176 : vector<16x1xf32> to vector<16x32xf32>
    %180 = arith.mulf %178, %179 : vector<16x32xf32>
    %181 = vector.broadcast %14 : vector<1x32xf32> to vector<16x32xf32>
    %182 = arith.mulf %180, %181 : vector<16x32xf32>
    %183 = vector.broadcast %15 : vector<1x32xf32> to vector<16x32xf32>
    %184 = arith.addf %182, %183 : vector<16x32xf32>
    %c0_53 = arith.constant 0 : index
    %c0_54 = arith.constant 0 : index
    %185 = vector.load %arg12[%c0_53, %c0_54] : memref<16x32xf32, #tpu.memory_space<vmem>>, vector<16x32xf32>
    tpu.vector_store %arg12[%c0_53, %c0_54], %184 {strides = array<i32>} : memref<16x32xf32, #tpu.memory_space<vmem>>, vector<16x32xf32>,
    return
  }
}

</mosaic_0001>

<bundles_post_ra>
// kernel: transformer_decoder_block.1
= control target key start
LH: loop header
LB: loop body
LE: loop exit
PB: predicated region body
PF: predicated region fallthrough
CT: control target
= control target key end

     0   :  { %v2619_v1 = vmov 0.0   ;;  %vm2620_vm0 = vmmov 0   ;;  %vm75_vm1 = vcmask 261120   ;;  %s3043_s0 = inlined_call_operand.vmem [shape: f32[16,32], index: 0, kind: input, shape index: {}]   ;;  %s3044_s1 = inlined_call_operand.vmem [shape: f32[24,32], index: 1, kind: input, shape index: {}]   ;;  %s3045_s2 = inlined_call_operand.vmem [shape: bf16[32,96], index: 2, kind: input, shape index: {}]   ;;  %s3046_s3 = inlined_call_operand.vmem [shape: bf16[32,32], index: 3, kind: input, shape index: {}]   ;;  %s3047_s4 = inlined_call_operand.vmem [shape: bf16[32,64], index: 4, kind: input, shape index: {}]   ;;  %s3048_s5 = inlined_call_operand.vmem [shape: bf16[32,32], index: 5, kind: input, shape index: {}]   ;;  %s3049_s6 = inlined_call_operand.vmem [shape: bf16[32,32], index: 6, kind: input, shape index: {}]   ;;  %s3050_s7 = inlined_call_operand.vmem [shape: bf16[32,64], index: 7, kind: input, shape index: {}]   ;;  %s3051_s8 = inlined_call_operand.vmem [shape: bf16[64,32], index: 8, kind: input, shape index: {}]   ;;  %s3052_s9 = inlined_call_operand.vmem [shape: f32[16,96], index: 9, kind: input, shape index: {}]   ;;  %s3053_s10 = inlined_call_operand.vmem [shape: f32[16,16], index: 10, kind: input, shape index: {}]   ;;  %s3054_s11 = inlined_call_operand.vmem [shape: f32[16,24], index: 11, kind: input, shape index: {}]   ;;  %s3055_s12 = inlined_call_operand.hbm [shape: f32[16,32], index: 12, kind: output, shape index: {}]  }
   0x1   :  { %v2502_v0 = vld [vmem:[%s3045_s2] sm:$0xff]   ;;  %2281 = vmatprep.subr.bf16.mxu0 %v2619_v1  ;;  %2295 = vmatprep.subr.bf16.mxu1 %v2619_v1  ;;  %v2503_v2 = vld [vmem:[%s3045_s2 + $0x8] sm:$0xff]  }
   0x2   :  { %2282 = vmatpush3.bf16.msra.mxu0 %v2502_v0  ;;  %2285 = vmatprep.mubr.msk.bf16.mxu0 %vm2620_vm0, %v2619_v1  ;;  %v2704_v3 = vld [vmem:[%s3043_s0] sm:$0xff]  ;;  %v2709_v4 = vld [vmem:[%s3043_s0 + $0x8] sm:$0xff] }
   0x3   :  { %2283 = vmatprep.subr.bf16.mxu0 %v2619_v1  ;;  %2297 = vmatprep.mubr.msk.bf16.mxu1 %vm2620_vm0, %v2619_v1  ;;  %v54_v5 = vpack.c.bf16 %v2709_v4, %v2704_v3 }
   0x6   :  { %2284 = vmatpush3.bf16.msra.mxu0 %v2503_v2 }
   0x7   :  { %2289 = vmatprep.subr.bf16.mxu0 %v2619_v1 }
   0x9   :  { %2286 = vmatmul.mubr.msk.bf16.vlgmr.msra.gmra.mrb[0].mxu0 %vm75_vm1, %v54_v5 }
   0xa   :  { %2291 = vmatprep.mubr.msk.bf16.mxu0 %vm2620_vm0, %v2619_v1 }
   0xb   :  { %17 = vsyncpa [#allocation3], 0  ;;  %v59_v6 = vlaneseq  ;;  %v2726_v9 = vld [vmem:[%s3052_s9] sm:$0xff]  ;;  %s2621_s29 = smov 96   ;;  %vm374_vm2 = vcmask 1043456   ;;  %vm370_vm3 = vcmask 64512  }
   0xc   :  { %v50_v54 = vld [vmem:[%s3053_s10] sm:$0xff]  ;;  %v51_v57 = vld [vmem:[%s3053_s10 + $0x8] sm:$0xff]  ;;  %vm560_vm4 = vcmask 130048   ;;  %s2622_s10 = smov 64   ;;  %vm1556_vm5 = vcmask 195584   ;;  %vm2078_vm6 = vcmask 523264  }
   0xd   :  { %v2720_v7 = vshrl.u32 %v59_v6, 7 }
   0xf   :  { %v61_v8 = vsub.s32 0, %v2720_v7 }
  0x11   :  { %v62_v10 = vrot.slane %v2726_v9, %v61_v8 }
  0xdc   :  { %v113_v11 = vpop.f32.mrb[0].mxu0 }
  0xdd   :  { %v2731_v12 = vadd.f32 %v113_v11, %v62_v10  ;;  %v2287_v13 = vpop.f32.mrb[1].mxu0 }
  0xde   :  { %v116_v14 = vpop.f32.mrb[2].mxu0 }
  0xdf   :  { %v2733_v15 = vadd.f32 %v116_v14, %v62_v10  ;;  %124 = vxpose.xlu1.b32.start [1/2] (short) (narrow) %v2731_v12, 32  ;;  %286 = vrot.lane.b32.xlu0 %v2731_v12, %s2621_s29  ;;  %v2288_v16 = vpop.f32.mrb[3].mxu0 }
  0xe1   :  { %v2468_v17 = vpack.i.bf16 %v2733_v15, %v2731_v12 }
  0xe3   :  { %125 = vxpose.xlu1.b32.end [2/2] (short) (narrow) %v2733_v15, 32  ;;  %288 = vrot.lane.b32.xlu0 %v2733_v15, %s2621_s29 }
 0x151   :  { %v287_v18 = vpop.permute.xlu0 %286 }
 0x152   :  { %292 = vxpose.xlu0.b32.start [1/2] (short) (narrow) %v287_v18, 32 }
 0x155   :  { %v289_v19 = vpop.permute.xlu0 %288 }
 0x156   :  { %293 = vxpose.xlu0.b32.end [2/2] (short) (narrow) %v289_v19, 32 }
 0x15f   :  { %v140_v20 = vpop.trf.xlu1 }
 0x163   :  { %v141_v21 = vpop.trf.xlu1 }
 0x164   :  { %v2444_v22 = vpack.i.bf16 %v141_v21, %v140_v20 }
 0x166   :  { %2445 = vxpose.xlu1.b32.start.end [1/1] (short) (narrow) %v2444_v22, 16 }
 0x167   :  { %v142_v23 = vpop.trf.xlu1 }
 0x16b   :  { %v143_v24 = vpop.trf.xlu1 }
 0x16c   :  { %v2456_v25 = vpack.i.bf16 %v143_v24, %v142_v23 }
 0x16e   :  { %2457 = vxpose.xlu1.b32.start.end [1/1] (short) (narrow) %v2456_v25, 16 }
 0x1d2   :  { %v308_v26 = vpop.trf.xlu0 }
 0x1d3   :  { %v366_v27 = vpack.c.bf16 %v308_v26, %v308_v26 }
 0x1d5   :  { %v376_v28 = vsel %vm374_vm2, %v366_v27, 0 }
 0x1d6   :  { %2290 = vmatpush3.bf16.msra.mxu0 %v376_v28  ;;  %v309_v29 = vpop.trf.xlu0 }
 0x1d7   :  { %v367_v30 = vpack.c.bf16 %v309_v29, %v309_v29  ;;  %2301 = vmatprep.subr.bf16.mxu0 %v2619_v1 }
 0x1d9   :  { %v423_v31 = vsel %vm374_vm2, %v367_v30, 0 }
 0x1da   :  { %2296 = vmatpush3.bf16.msra.mxu1 %v423_v31  ;;  %v310_v32 = vpop.trf.xlu0 }
 0x1db   :  { %2307 = vmatprep.subr.bf16.mxu1 %v2619_v1  ;;  %v368_v35 = vpack.c.bf16 %v310_v32, %v310_v32 }
 0x1dd   :  { %v470_v43 = vsel %vm374_vm2, %v368_v35, 0 }
 0x1de   :  { %v311_v34 = vpop.trf.xlu0 }
 0x1df   :  { %v369_v36 = vpack.c.bf16 %v311_v34, %v311_v34 }
 0x1e1   :  { %v517_v45 = vsel %vm374_vm2, %v369_v36, 0 }
 0x1e6   :  { %v2446_v33 = vpop.trf.xlu1 }
 0x1e7   :  { %v2450_v37 = vunpack.i.h.bf16 %v2446_v33  ;;  %v2447_v38 = vunpack.i.l.bf16 %v2446_v33 }
 0x1ea   :  { %v2451_v39 = vpop.trf.xlu1 }
 0x1eb   :  { %v2455_v40 = vunpack.i.h.bf16 %v2451_v39  ;;  %v2452_v41 = vunpack.i.l.bf16 %v2451_v39 }
 0x1ed   :  { %v362_v42 = vpack.c.bf16 %v2452_v41, %v2447_v38  ;;  %v363_v44 = vpack.c.bf16 %v2455_v40, %v2450_v37 }
 0x1ee   :  { %v2458_v46 = vpop.trf.xlu1 }
 0x1ef   :  { %2292 = vmatmul.mubr.msk.bf16.vlgmr.msra.gmra.mrb[4].mxu0 %vm370_vm3, %v362_v42  ;;  %2298 = vmatmul.mubr.msk.bf16.vlgmr.msra.gmra.mrb[0].mxu1 %vm370_vm3, %v363_v44  ;;  %v2462_v47 = vunpack.i.h.bf16 %v2458_v46  ;;  %v2459_v48 = vunpack.i.l.bf16 %v2458_v46 }
 0x1f0   :  { %2302 = vmatpush3.bf16.msra.mxu0 %v470_v43  ;;  %2308 = vmatpush3.bf16.msra.mxu1 %v517_v45 }
 0x1f1   :  { %2303 = vmatprep.mubr.msk.bf16.mxu0 %vm2620_vm0, %v2619_v1  ;;  %2309 = vmatprep.mubr.msk.bf16.mxu1 %vm2620_vm0, %v2619_v1 }
 0x1f2   :  { %v2463_v49 = vpop.trf.xlu1  ;;  %2313 = vmatprep.subr.bf16.mxu0 %v2619_v1  ;;  %2319 = vmatprep.subr.bf16.mxu1 %v2619_v1 }
 0x1f3   :  { %v2467_v50 = vunpack.i.h.bf16 %v2463_v49  ;;  %v2464_v51 = vunpack.i.l.bf16 %v2463_v49 }
 0x1f5   :  { %v364_v52 = vpack.c.bf16 %v2464_v51, %v2459_v48  ;;  %v365_v53 = vpack.c.bf16 %v2467_v50, %v2462_v47 }
 0x1f7   :  { %2304 = vmatmul.mubr.msk.bf16.vlgmr.msra.gmra.mrb[8].mxu0 %vm370_vm3, %v364_v52  ;;  %2310 = vmatmul.mubr.msk.bf16.vlgmr.msra.gmra.mrb[4].mxu1 %vm370_vm3, %v365_v53 }
 0x1f8   :  { %2315 = vmatprep.mubr.msk.bf16.mxu0 %vm2620_vm0, %v2619_v1  ;;  %2321 = vmatprep.mubr.msk.bf16.mxu1 %vm2620_vm0, %v2619_v1 }
 0x2c2   :  { %v412_v55 = vpop.f32.mrb[4].mxu0  ;;  %v459_v56 = vpop.f32.mrb[0].mxu1 }
 0x2c3   :  { %v413_v58 = vadd.f32 %v412_v55, %v50_v54  ;;  %v2293_v59 = vpop.f32.mrb[5].mxu0  ;;  %v2299_v60 = vpop.f32.mrb[1].mxu1  ;;  %v460_v63 = vadd.f32 %v459_v56, %v50_v54 }
 0x2c4   :  { %v415_v61 = vpop.f32.mrb[6].mxu0  ;;  %v462_v62 = vpop.f32.mrb[2].mxu1 }
 0x2c5   :  { %v416_v0 = vadd.f32 %v415_v61, %v51_v57  ;;  %v2294_v2 = vpop.f32.mrb[7].mxu0  ;;  %v2300_v5 = vpop.f32.mrb[3].mxu1  ;;  %v561_v6 = vsel %vm560_vm4, %v413_v58, -inf  ;;  %v463_v11 = vadd.f32 %v462_v62, %v51_v57  ;;  %v567_v13 = vsel %vm560_vm4, %v460_v63, -inf }
 0x2c6   :  { %562 = vmax.xlane.f32.xlu1 %v561_v6 }
 0x2c7   :  { %v564_v10 = vsel %vm560_vm4, %v416_v0, -inf  ;;  %v570_v25 = vsel %vm560_vm4, %v463_v11, -inf }
 0x2c8   :  { %565 = vmax.xlane.f32.xlu0 %v564_v10 }
 0x2ca   :  { %v553_v14 = vpop.f32.mrb[4].mxu1  ;;  %568 = vmax.xlane.f32.xlu1 %v567_v13  ;;  %v506_v16 = vpop.f32.mrb[8].mxu0 }
 0x2cb   :  { %v2305_v18 = vpop.f32.mrb[9].mxu0  ;;  %v2311_v19 = vpop.f32.mrb[5].mxu1  ;;  %v507_v22 = vadd.f32 %v506_v16, %v50_v54  ;;  %v554_v28 = vadd.f32 %v553_v14, %v50_v54 }
 0x2cc   :  { %v509_v20 = vpop.f32.mrb[10].mxu0  ;;  %v556_v21 = vpop.f32.mrb[6].mxu1 }
 0x2cd   :  { %v2306_v23 = vpop.f32.mrb[11].mxu0  ;;  %v2312_v24 = vpop.f32.mrb[7].mxu1  ;;  %v510_v26 = vadd.f32 %v509_v20, %v51_v57  ;;  %v573_v27 = vsel %vm560_vm4, %v507_v22, -inf  ;;  %v557_v30 = vadd.f32 %v556_v21, %v51_v57  ;;  %v579_v31 = vsel %vm560_vm4, %v554_v28, -inf }
 0x2ce   :  { %571 = vmax.xlane.f32.xlu1 %v570_v25 }
 0x2cf   :  { %v576_v29 = vsel %vm560_vm4, %v510_v26, -inf  ;;  %v582_v32 = vsel %vm560_vm4, %v557_v30, -inf }
 0x2d2   :  { %574 = vmax.xlane.f32.xlu1 %v573_v27 }
 0x2d6   :  { %577 = vmax.xlane.f32.xlu1 %v576_v29 }
 0x2da   :  { %580 = vmax.xlane.f32.xlu1 %v579_v31 }
 0x2de   :  { %583 = vmax.xlane.f32.xlu1 %v582_v32 }
 0x2ef   :  { %2469 = vrot.lane.b32.xlu1 %v2468_v17, %s2622_s10 }
 0x353   :  { %v563_v33 = vpop.xlane.xlu1 %562 }
 0x354   :  { %v585_v34 = vsub.f32 %v413_v58, %v563_v33 }
 0x355   :  { %v566_v35 = vpop.xlane.xlu0 %565 }
 0x356   :  { %v593_v36 = vmul.f32 1.442695, %v585_v34  ;;  %v586_v37 = vsub.f32 %v416_v0, %v566_v35 }
 0x357   :  { %v569_v38 = vpop.xlane.xlu1 %568 }
 0x358   :  { %2518 = vpow2.f32 %v593_v36  ;;  %v595_v39 = vmul.f32 1.442695, %v586_v37  ;;  %v587_v40 = vsub.f32 %v460_v63, %v569_v38 }
 0x35a   :  { %2520 = vpow2.f32 %v595_v39  ;;  %v597_v41 = vmul.f32 1.442695, %v587_v40 }
 0x35b   :  { %v572_v42 = vpop.xlane.xlu1 %571 }
 0x35c   :  { %v588_v43 = vsub.f32 %v463_v11, %v572_v42  ;;  %2522 = vpow2.f32 %v597_v41 }
 0x35e   :  { %v599_v44 = vmul.f32 1.442695, %v588_v43 }
 0x35f   :  { %v575_v45 = vpop.xlane.xlu1 %574 }
 0x360   :  { %2524 = vpow2.f32 %v599_v44  ;;  %v589_v46 = vsub.f32 %v507_v22, %v575_v45 }
 0x362   :  { %v2519_v12 = vpop.eup %2518  ;;  %v601_v15 = vmul.f32 1.442695, %v589_v46 }
 0x363   :  { %v578_v17 = vpop.xlane.xlu1 %577  ;;  %v609_v47 = vsel %vm560_vm4, %v2519_v12, 0.0 }
 0x364   :  { %v2521_v48 = vpop.eup %2520  ;;  %2526 = vpow2.f32 %v601_v15  ;;  %v590_v49 = vsub.f32 %v510_v26, %v578_v17  ;;  %610 = vadd.xlane.f32.xlu0 %v609_v47 }
 0x365   :  { %v612_v52 = vsel %vm560_vm4, %v2521_v48, 0.0 }
 0x366   :  { %v603_v50 = vmul.f32 1.442695, %v590_v49  ;;  %v2523_v53 = vpop.eup %2522 }
 0x367   :  { %v581_v51 = vpop.xlane.xlu1 %580  ;;  %v615_v58 = vsel %vm560_vm4, %v2523_v53, 0.0 }
 0x368   :  { %2528 = vpow2.f32 %v603_v50  ;;  %v591_v54 = vsub.f32 %v554_v28, %v581_v51  ;;  %613 = vadd.xlane.f32.xlu0 %v612_v52 }
 0x36a   :  { %v2525_v55 = vpop.eup %2524  ;;  %v605_v56 = vmul.f32 1.442695, %v591_v54 }
 0x36b   :  { %v584_v57 = vpop.xlane.xlu1 %583  ;;  %v618_v59 = vsel %vm560_vm4, %v2525_v55, 0.0 }
 0x36c   :  { %2530 = vpow2.f32 %v605_v56  ;;  %v592_v60 = vsub.f32 %v557_v30, %v584_v57  ;;  %616 = vadd.xlane.f32.xlu0 %v615_v58  ;;  %619 = vadd.xlane.f32.xlu1 %v618_v59  ;;  %v2505_v58 = vld [vmem:[%s3048_s5 + $0x8] sm:$0xff]  }
 0x36e   :  { %v2527_v61 = vpop.eup %2526  ;;  %v607_v62 = vmul.f32 1.442695, %v592_v60 }
 0x36f   :  { %v621_v63 = vsel %vm560_vm4, %v2527_v61, 0.0  ;;  %v2470_v13 = vpop.permute.xlu1 %2469 }
 0x370   :  { %2532 = vpow2.f32 %v607_v62  ;;  %622 = vadd.xlane.f32.xlu0 %v621_v63  ;;  %v2471_v14 = vunpack.i.l.bf16 %v2470_v13  ;;  %v2472_v16 = vunpack.i.h.bf16 %v2470_v13 }
 0x372   :  { %v2529_v0 = vpop.eup %2528 }
 0x373   :  { %v624_v2 = vsel %vm560_vm4, %v2529_v0, 0.0 }
 0x374   :  { %625 = vadd.xlane.f32.xlu0 %v624_v2 }
 0x376   :  { %v2531_v5 = vpop.eup %2530 }
 0x377   :  { %v627_v6 = vsel %vm560_vm4, %v2531_v5, 0.0 }
 0x378   :  { %628 = vadd.xlane.f32.xlu0 %v627_v6 }
 0x37a   :  { %v2533_v10 = vpop.eup %2532 }
 0x37b   :  { %v630_v11 = vsel %vm560_vm4, %v2533_v10, 0.0 }
 0x37c   :  { %631 = vadd.xlane.f32.xlu0 %v630_v11 }
 0x3a9   :  { %330 = vxpose.xlu0.b32.start [1/2] (short) (narrow) %v2471_v14, 32 }
 0x3ad   :  { %331 = vxpose.xlu0.b32.end [2/2] (short) (narrow) %v2472_v16, 32 }
 0x3f1   :  { %v611_v18 = vpop.xlane.xlu0 %610 }
 0x3f2   :  { %2534 = vrcp.f32 %v611_v18 }
 0x3f5   :  { %v614_v19 = vpop.xlane.xlu0 %613 }
 0x3f6   :  { %2536 = vrcp.f32 %v614_v19 }
 0x3f9   :  { %v617_v20 = vpop.xlane.xlu0 %616  ;;  %v620_v21 = vpop.xlane.xlu1 %619 }
 0x3fa   :  { %2538 = vrcp.f32 %v617_v20 }
 0x3fb   :  { %2540 = vrcp.f32 %v620_v21  ;;  %v876_v21 = vsub.s32 3, %v2720_v7 }
 0x3fc   :  { %v2535_v22 = vpop.eup %2534 }
 0x3fd   :  { %v641_v24 = vmul.f32 %v2535_v22, %v2519_v12  ;;  %v623_v31 = vpop.xlane.xlu0 %622  ;;  %v877_v22 = vrot.slane %v2726_v9, %v876_v21 }
 0x400   :  { %v2537_v23 = vpop.eup %2536 }
 0x401   :  { %v642_v25 = vmul.f32 %v2537_v23, %v2521_v48  ;;  %v626_v35 = vpop.xlane.xlu0 %625 }
 0x402   :  { %2542 = vrcp.f32 %v626_v35 }
 0x403   :  { %v653_v26 = vpack.c.bf16 %v642_v25, %v641_v24  ;;  %2544 = vrcp.f32 %v623_v31 }
 0x404   :  { %v2539_v27 = vpop.eup %2538 }
 0x405   :  { %v2541_v28 = vpop.eup %2540  ;;  %v661_v29 = vsel %vm560_vm4, %v653_v26, 0  ;;  %v643_v30 = vmul.f32 %v2539_v27, %v2523_v53  ;;  %v629_v36 = vpop.xlane.xlu0 %628 }
 0x406   :  { %2314 = vmatpush3.bf16.xpose.msra.mxu0 %v661_v29  ;;  %v644_v32 = vmul.f32 %v2541_v28, %v2525_v55  ;;  %v2504_v55 = vld [vmem:[%s3048_s5] sm:$0xff]  }
 0x407   :  { %2325 = vmatprep.subr.bf16.mxu0 %v2619_v1 }
 0x408   :  { %v654_v33 = vpack.c.bf16 %v644_v32, %v643_v30 }
 0x409   :  { %v632_v37 = vpop.xlane.xlu0 %631 }
 0x40a   :  { %v707_v34 = vsel %vm560_vm4, %v654_v33, 0  ;;  %2546 = vrcp.f32 %v632_v37  ;;  %v2508_v37 = vld [vmem:[%s3047_s4] sm:$0xff]  }
 0x40b   :  { %2320 = vmatpush3.bf16.xpose.msra.mxu1 %v707_v34  ;;  %2548 = vrcp.f32 %v629_v36 }
 0x40c   :  { %2331 = vmatprep.subr.bf16.mxu1 %v2619_v1  ;;  %v2543_v38 = vpop.eup %2542 }
 0x40d   :  { %v2545_v39 = vpop.eup %2544  ;;  %v646_v40 = vmul.f32 %v2543_v38, %v2529_v0  ;;  %v2509_v38 = vld [vmem:[%s3047_s4 + $0x8] sm:$0xff]  }
 0x40e   :  { %v645_v42 = vmul.f32 %v2545_v39, %v2527_v61  ;;  %v45_v39 = vld [vmem:[%s3044_s1] sm:$0xff] }
 0x410   :  { %v655_v44 = vpack.c.bf16 %v646_v40, %v645_v42  ;;  %v46_v40 = vld [vmem:[%s3044_s1 + $0x8] sm:$0xff]  ;;  %v47_v42 = vld [vmem:[%s3044_s1 + $0x10] sm:$0xff] }
 0x412   :  { %v753_v17 = vsel %vm560_vm4, %v655_v44, 0 }
 0x414   :  { %v2547_v41 = vpop.eup %2546 }
 0x415   :  { %v2549_v43 = vpop.eup %2548  ;;  %v648_v45 = vmul.f32 %v2547_v41, %v2533_v10  ;;  %v1044_v41 = vpack.c.bf16 %v46_v40, %v45_v39 }
 0x416   :  { %v647_v15 = vmul.f32 %v2549_v43, %v2531_v5  ;;  %v1045_v43 = vpack.c.bf16 %v47_v42, %v47_v42 }
 0x418   :  { %v656_v47 = vpack.c.bf16 %v648_v45, %v647_v15 }
 0x41a   :  { %v799_v50 = vsel %vm560_vm4, %v656_v47, 0 }
 0x429   :  { %v346_v46 = vpop.trf.xlu0 }
 0x42a   :  { %v649_v12 = vpack.c.bf16 %v346_v46, %v346_v46 }
 0x42c   :  { %2316 = vmatmul.mubr.msk.bf16.vlgmr.msra.gmra.mrb[12].mxu0 %vm560_vm4, %v649_v12 }
 0x42d   :  { %2326 = vmatpush3.bf16.xpose.msra.mxu0 %v753_v17  ;;  %v347_v48 = vpop.trf.xlu0  ;;  %2327 = vmatprep.mubr.msk.bf16.mxu0 %vm2620_vm0, %v2619_v1 }
 0x42e   :  { %v650_v49 = vpack.c.bf16 %v347_v48, %v347_v48  ;;  %2337 = vmatprep.subr.bf16.mxu0 %v2619_v1 }
 0x430   :  { %2322 = vmatmul.mubr.msk.bf16.vlgmr.msra.gmra.mrb[8].mxu1 %vm560_vm4, %v650_v49 }
 0x431   :  { %2332 = vmatpush3.bf16.xpose.msra.mxu1 %v799_v50  ;;  %v348_v51 = vpop.trf.xlu0  ;;  %2333 = vmatprep.mubr.msk.bf16.mxu1 %vm2620_vm0, %v2619_v1 }
 0x432   :  { %v651_v52 = vpack.c.bf16 %v348_v51, %v348_v51  ;;  %2345 = vmatprep.subr.bf16.mxu1 %v2619_v1 }
 0x434   :  { %2328 = vmatmul.mubr.msk.bf16.vlgmr.msra.gmra.mrb[16].mxu0 %vm560_vm4, %v651_v52 }
 0x435   :  { %v349_v53 = vpop.trf.xlu0  ;;  %2341 = vmatprep.mubr.msk.bf16.mxu0 %vm2620_vm0, %v2619_v1  ;;  %2338 = vmatpush3.bf16.msra.mxu0 %v2504_v55  ;;  %v969_v55 = vsub.s32 7, %v2720_v7 }
 0x436   :  { %v652_v54 = vpack.c.bf16 %v349_v53, %v349_v53  ;;  %2339 = vmatprep.subr.bf16.mxu0 %v2619_v1 }
 0x438   :  { %2334 = vmatmul.mubr.msk.bf16.vlgmr.msra.gmra.mrb[12].mxu1 %vm560_vm4, %v652_v54 }
 0x439   :  { %2349 = vmatprep.mubr.msk.bf16.mxu1 %vm2620_vm0, %v2619_v1  ;;  %2340 = vmatpush3.bf16.msra.mxu0 %v2505_v58 }
 0x43a   :  { %2353 = vmatprep.subr.bf16.mxu0 %v2508_v37 }
 0x4ff   :  { %v697_v56 = vpop.f32.mrb[12].mxu0 }
 0x500   :  { %841 = vxpose.xlu1.b32.start [1/4] (short) (narrow) %v697_v56, 16  ;;  %v2317_v57 = vpop.f32.mrb[13].mxu0 }
 0x501   :  { %v700_v59 = vpop.f32.mrb[14].mxu0 }
 0x502   :  { %v2318_v60 = vpop.f32.mrb[15].mxu0  ;;  %v970_v59 = vrot.slane %v2726_v9, %v969_v55 }
 0x503   :  { %v743_v61 = vpop.f32.mrb[8].mxu1  ;;  %v2859_v60 = vld [vmem:[%s3052_s9 + $0x8] sm:$0xff] }
 0x504   :  { %v2323_v62 = vpop.f32.mrb[9].mxu1  ;;  %842 = vxpose.xlu1.b32.cont [2/4] (short) (narrow) %v743_v61, 16 }
 0x505   :  { %v746_v63 = vpop.f32.mrb[10].mxu1 }
 0x506   :  { %v2324_v0 = vpop.f32.mrb[11].mxu1  ;;  %v976_v63 = vrot.slane %v2859_v60, %v61_v8 }
 0x507   :  { %v789_v2 = vpop.f32.mrb[16].mxu0 }
 0x508   :  { %843 = vxpose.xlu1.b32.cont [3/4] (short) (narrow) %v789_v2, 16  ;;  %v2329_v5 = vpop.f32.mrb[17].mxu0 }
 0x509   :  { %v792_v6 = vpop.f32.mrb[18].mxu0 }
 0x50a   :  { %v2330_v10 = vpop.f32.mrb[19].mxu0 }
 0x50b   :  { %v835_v11 = vpop.f32.mrb[12].mxu1 }
 0x50c   :  { %v2335_v13 = vpop.f32.mrb[13].mxu1  ;;  %844 = vxpose.xlu1.b32.end [4/4] (short) (narrow) %v835_v11, 16 }
 0x50d   :  { %v838_v14 = vpop.f32.mrb[14].mxu1  ;;  %v1052_v13 = vsub.s32 2, %v2720_v7 }
 0x50e   :  { %v2336_v16 = vpop.f32.mrb[15].mxu1 }
 0x50f   :  { %v1053_v8 = vrot.slane %v2726_v9, %v1052_v13 }
 0x580   :  { %v857_v18 = vpop.trf.xlu1 }
 0x584   :  { %v858_v19 = vpop.trf.xlu1 }
 0x585   :  { %v873_v20 = vpack.c.bf16 %v858_v19, %v857_v18 }
 0x587   :  { %2342 = vmatmul.mubr.msk.bf16.vlgmr.msra.gmra.mrb[20].mxu0 %vm75_vm1, %v873_v20 }
 0x588   :  { %2354 = vmatpush3.bf16.msra.mxu0 %v2508_v37  ;;  %2357 = vmatprep.mubr.msk.bf16.mxu0 %vm75_vm1, %v1044_v41 }
 0x589   :  { %2355 = vmatprep.subr.bf16.mxu0 %v2509_v38 }
 0x58c   :  { %2356 = vmatpush3.bf16.msra.mxu0 %v2509_v38 }
 0x58d   :  { %2367 = vmatprep.subr.bf16.mxu0 %v2619_v1 }
 0x58f   :  { %2358 = vmatmul.mubr.msk.bf16.vlgmr.msra.gmra.mrb[24].mxu0 %vm75_vm1, %v1045_v43 }
 0x590   :  { %2369 = vmatprep.mubr.msk.bf16.mxu0 %vm2620_vm0, %v2619_v1 }
 0x65a   :  { %v927_v23 = vpop.f32.mrb[20].mxu0 }
 0x65b   :  { %v928_v24 = vadd.f32 %v927_v23, %v877_v22  ;;  %v2343_v25 = vpop.f32.mrb[21].mxu0 }
 0x65c   :  { %v930_v26 = vpop.f32.mrb[22].mxu0  ;;  %v986_v25 = vsub.s32 1, %v2720_v7 }
 0x65d   :  { %v934_v27 = vadd.f32 %v928_v24, %v2704_v3  ;;  %v931_v28 = vadd.f32 %v930_v26, %v877_v22  ;;  %v2344_v29 = vpop.f32.mrb[23].mxu0  ;;  %v2506_v3 = vld [vmem:[%s3046_s3] sm:$0xff]  }
 0x65e   :  { %2346 = vmatpush3.bf16.msra.mxu1 %v2506_v3  ;;  %v987_v26 = vrot.slane %v2726_v9, %v986_v25 }
 0x65f   :  { %v935_v30 = vadd.f32 %v931_v28, %v2709_v4  ;;  %v936_v31 = vsel %vm75_vm1, %v934_v27, 0.0  ;;  %v945_v32 = vmul.f32 %v934_v27, %v934_v27  ;;  %v2507_v4 = vld [vmem:[%s3046_s3 + $0x8] sm:$0xff]   ;;  %2347 = vmatprep.subr.bf16.mxu1 %v2619_v1 }
 0x660   :  { %937 = vadd.xlane.f32.xlu0 %v936_v31 }
 0x661   :  { %v939_v33 = vsel %vm75_vm1, %v935_v30, 0.0  ;;  %v947_v34 = vsel %vm75_vm1, %v945_v32, 0.0  ;;  %v946_v35 = vmul.f32 %v935_v30, %v935_v30 }
 0x662   :  { %940 = vadd.xlane.f32.xlu1 %v939_v33  ;;  %2348 = vmatpush3.bf16.msra.mxu1 %v2507_v4  ;;  %v2359_v14 = vpop.f32.mrb[24].mxu0 }
 0x663   :  { %v950_v36 = vsel %vm75_vm1, %v946_v35, 0.0  ;;  %2361 = vmatprep.subr.bf16.mxu1 %v2619_v1  ;;  %v1106_v16 = vpop.f32.mrb[25].mxu0  ;;  %v2884_v24 = vadd.f32 %v2359_v14, %v1053_v8 }
 0x664   :  { %948 = vadd.xlane.f32.xlu0 %v947_v34  ;;  %v2877_v18 = vadd.f32 %v1106_v16, %v1053_v8  ;;  %v2360_v19 = vpop.f32.mrb[26].mxu0 }
 0x665   :  { %v1109_v20 = vpop.f32.mrb[27].mxu0 }
 0x666   :  { %v2880_v22 = vadd.f32 %v1109_v20, %v1053_v8 }
 0x668   :  { %951 = vadd.xlane.f32.xlu0 %v950_v36  ;;  %v2497_v23 = vpack.i.bf16 %v2880_v22, %v2877_v18 }
 0x695   :  { %1284 = vxpose.xlu1.b32.start [1/3] (short) (narrow) %v2877_v18, 32 }
 0x699   :  { %1285 = vxpose.xlu1.b32.cont [2/3] (short) (narrow) %v2880_v22, 32 }
 0x69d   :  { %1286 = vxpose.xlu1.b32.end [3/3] (short) (narrow) %v2884_v24, 32 }
 0x6ed   :  { %v938_v44 = vpop.xlane.xlu0 %937 }
 0x6ee   :  { %v943_v45 = vmul.f32 0.03125, %v938_v44 }
 0x6ef   :  { %v941_v46 = vpop.xlane.xlu1 %940 }
 0x6f0   :  { %v955_v15 = vmul.f32 %v943_v45, %v943_v45  ;;  %v944_v17 = vmul.f32 0.03125, %v941_v46  ;;  %v963_v56 = vsub.f32 %v934_v27, %v943_v45 }
 0x6f1   :  { %v949_v12 = vpop.xlane.xlu0 %948 }
 0x6f2   :  { %v953_v47 = vmul.f32 0.03125, %v949_v12  ;;  %v956_v50 = vmul.f32 %v944_v17, %v944_v17  ;;  %v964_v61 = vsub.f32 %v935_v30, %v944_v17 }
 0x6f4   :  { %v957_v48 = vsub.f32 %v953_v47, %v955_v15 }
 0x6f5   :  { %v952_v49 = vpop.xlane.xlu0 %951 }
 0x6f6   :  { %v959_v51 = vadd.f32 1e-05, %v957_v48  ;;  %v954_v52 = vmul.f32 0.03125, %v952_v49 }
 0x6f8   :  { %2550 = vrsqrt.f32 %v959_v51  ;;  %v958_v53 = vsub.f32 %v954_v52, %v956_v50 }
 0x6fa   :  { %v960_v54 = vadd.f32 1e-05, %v958_v53 }
 0x6fc   :  { %2552 = vrsqrt.f32 %v960_v54 }
 0x702   :  { %v2551_v57 = vpop.eup %2550 }
 0x703   :  { %v965_v58 = vmul.f32 %v2551_v57, %v963_v56 }
 0x705   :  { %v971_v2 = vmul.f32 %v970_v59, %v965_v58 }
 0x706   :  { %v2553_v62 = vpop.eup %2552 }
 0x707   :  { %v966_v0 = vmul.f32 %v2553_v62, %v964_v61  ;;  %v2864_v6 = vadd.f32 %v976_v63, %v971_v2  ;;  %v52_v62 = vld [vmem:[%s3054_s11] sm:$0xff]  ;;  %v53_v2 = vld [vmem:[%s3054_s11 + $0x8] sm:$0xff] }
 0x709   :  { %v972_v5 = vmul.f32 %v970_v59, %v966_v0 }
 0x70b   :  { %v2866_v10 = vadd.f32 %v976_v63, %v972_v5 }
 0x70d   :  { %v979_v11 = vpack.c.bf16 %v2866_v10, %v2864_v6 }
 0x70f   :  { %2350 = vmatmul.mubr.msk.bf16.vlgmr.msra.gmra.mrb[16].mxu1 %vm75_vm1, %v979_v11 }
 0x710   :  { %2363 = vmatprep.mubr.msk.bf16.mxu1 %vm2620_vm0, %v2619_v1 }
 0x715   :  { %v1300_v33 = vpop.trf.xlu1 }
 0x716   :  { %v1364_v34 = vpack.c.bf16 %v1300_v33, %v1300_v33 }
 0x718   :  { %v1372_v35 = vsel %vm374_vm2, %v1364_v34, 0 }
 0x719   :  { %2362 = vmatpush3.bf16.msra.mxu1 %v1372_v35  ;;  %v1301_v37 = vpop.trf.xlu1 }
 0x71a   :  { %2373 = vmatprep.subr.bf16.mxu1 %v2619_v1  ;;  %v1365_v38 = vpack.c.bf16 %v1301_v37, %v1301_v37 }
 0x71c   :  { %v1419_v39 = vsel %vm374_vm2, %v1365_v38, 0 }
 0x71d   :  { %2368 = vmatpush3.bf16.msra.mxu0 %v1419_v39  ;;  %v1302_v42 = vpop.trf.xlu1 }
 0x71e   :  { %2379 = vmatprep.subr.bf16.mxu0 %v2619_v1  ;;  %v1366_v45 = vpack.c.bf16 %v1302_v42, %v1302_v42 }
 0x720   :  { %v1466_v51 = vsel %vm374_vm2, %v1366_v45, 0 }
 0x721   :  { %v1303_v44 = vpop.trf.xlu1 }
 0x722   :  { %v1367_v46 = vpack.c.bf16 %v1303_v44, %v1303_v44 }
 0x724   :  { %v1513_v52 = vsel %vm374_vm2, %v1367_v46, 0 }
 0x7e2   :  { %v1037_v27 = vpop.f32.mrb[16].mxu1 }
 0x7e3   :  { %v1038_v28 = vadd.f32 %v1037_v27, %v987_v26  ;;  %v2351_v29 = vpop.f32.mrb[17].mxu1 }
 0x7e4   :  { %v1040_v30 = vpop.f32.mrb[18].mxu1 }
 0x7e5   :  { %1124 = vxpose.xlu0.b32.start [1/2] (short) (narrow) %v1038_v28, 32  ;;  %v2352_v31 = vpop.f32.mrb[19].mxu1  ;;  %v1041_v32 = vadd.f32 %v1040_v30, %v987_v26 }
 0x7e9   :  { %1125 = vxpose.xlu0.b32.end [2/2] (short) (narrow) %v1041_v32, 32 }
 0x865   :  { %v1140_v36 = vpop.trf.xlu0 }
 0x869   :  { %v1141_v3 = vpop.trf.xlu0 }
 0x86a   :  { %v2473_v4 = vpack.i.bf16 %v1141_v3, %v1140_v36 }
 0x86c   :  { %2474 = vxpose.xlu0.b32.start.end [1/1] (short) (narrow) %v2473_v4, 16 }
 0x86d   :  { %v1142_v9 = vpop.trf.xlu0 }
 0x871   :  { %v1143_v40 = vpop.trf.xlu0 }
 0x872   :  { %v2485_v41 = vpack.i.bf16 %v1143_v40, %v1142_v9 }
 0x874   :  { %2486 = vxpose.xlu0.b32.start.end [1/1] (short) (narrow) %v2485_v41, 16 }
 0x8ec   :  { %v2475_v43 = vpop.trf.xlu0 }
 0x8ed   :  { %v2479_v12 = vunpack.i.h.bf16 %v2475_v43  ;;  %v2476_v15 = vunpack.i.l.bf16 %v2475_v43 }
 0x8f0   :  { %v2480_v17 = vpop.trf.xlu0 }
 0x8f1   :  { %v2484_v47 = vunpack.i.h.bf16 %v2480_v17  ;;  %v2481_v48 = vunpack.i.l.bf16 %v2480_v17 }
 0x8f3   :  { %v1360_v49 = vpack.c.bf16 %v2481_v48, %v2476_v15  ;;  %v1361_v50 = vpack.c.bf16 %v2484_v47, %v2479_v12 }
 0x8f4   :  { %v2487_v53 = vpop.trf.xlu0 }
 0x8f5   :  { %2364 = vmatmul.mubr.msk.bf16.vlgmr.msra.gmra.mrb[20].mxu1 %vm370_vm3, %v1360_v49  ;;  %2370 = vmatmul.mubr.msk.bf16.vlgmr.msra.gmra.mrb[28].mxu0 %vm370_vm3, %v1361_v50  ;;  %v2491_v54 = vunpack.i.h.bf16 %v2487_v53  ;;  %v2488_v55 = vunpack.i.l.bf16 %v2487_v53 }
 0x8f6   :  { %2374 = vmatpush3.bf16.msra.mxu1 %v1466_v51  ;;  %2380 = vmatpush3.bf16.msra.mxu0 %v1513_v52 }
 0x8f7   :  { %2375 = vmatprep.mubr.msk.bf16.mxu1 %vm2620_vm0, %v2619_v1  ;;  %2381 = vmatprep.mubr.msk.bf16.mxu0 %vm2620_vm0, %v2619_v1 }
 0x8f8   :  { %v2492_v56 = vpop.trf.xlu0  ;;  %2385 = vmatprep.subr.bf16.mxu1 %v2619_v1  ;;  %2391 = vmatprep.subr.bf16.mxu0 %v2619_v1 }
 0x8f9   :  { %v2496_v57 = vunpack.i.h.bf16 %v2492_v56  ;;  %v2493_v58 = vunpack.i.l.bf16 %v2492_v56 }
 0x8fb   :  { %v1362_v59 = vpack.c.bf16 %v2493_v58, %v2488_v55  ;;  %v1363_v61 = vpack.c.bf16 %v2496_v57, %v2491_v54 }
 0x8fd   :  { %2376 = vmatmul.mubr.msk.bf16.vlgmr.msra.gmra.mrb[24].mxu1 %vm370_vm3, %v1362_v59  ;;  %2382 = vmatmul.mubr.msk.bf16.vlgmr.msra.gmra.mrb[32].mxu0 %vm370_vm3, %v1363_v61 }
 0x8fe   :  { %2387 = vmatprep.mubr.msk.bf16.mxu1 %vm2620_vm0, %v2619_v1  ;;  %2393 = vmatprep.mubr.msk.bf16.mxu0 %vm2620_vm0, %v2619_v1 }
 0x9c8   :  { %v1408_v63 = vpop.f32.mrb[20].mxu1  ;;  %v1455_v0 = vpop.f32.mrb[28].mxu0 }
 0x9c9   :  { %v1409_v5 = vadd.f32 %v1408_v63, %v52_v62  ;;  %v2365_v11 = vpop.f32.mrb[21].mxu1  ;;  %v2371_v8 = vpop.f32.mrb[29].mxu0  ;;  %v1456_v19 = vadd.f32 %v1455_v0, %v52_v62 }
 0x9ca   :  { %v1411_v14 = vpop.f32.mrb[22].mxu1  ;;  %v1458_v16 = vpop.f32.mrb[30].mxu0 }
 0x9cb   :  { %v1412_v20 = vadd.f32 %v1411_v14, %v53_v2  ;;  %v2366_v26 = vpop.f32.mrb[23].mxu1  ;;  %v2372_v27 = vpop.f32.mrb[31].mxu0  ;;  %v1557_v28 = vsel %vm1556_vm5, %v1409_v5, -inf  ;;  %v1459_v29 = vadd.f32 %v1458_v16, %v53_v2  ;;  %v1563_v31 = vsel %vm1556_vm5, %v1456_v19, -inf }
 0x9cc   :  { %1558 = vmax.xlane.f32.xlu0 %v1557_v28 }
 0x9cd   :  { %v1560_v30 = vsel %vm1556_vm5, %v1412_v20, -inf  ;;  %v1566_v3 = vsel %vm1556_vm5, %v1459_v29, -inf }
 0x9ce   :  { %1561 = vmax.xlane.f32.xlu1 %v1560_v30 }
 0x9d0   :  { %1564 = vmax.xlane.f32.xlu0 %v1563_v31  ;;  %v1502_v32 = vpop.f32.mrb[24].mxu1  ;;  %v1549_v33 = vpop.f32.mrb[32].mxu0 }
 0x9d1   :  { %v1503_v34 = vadd.f32 %v1502_v32, %v52_v62  ;;  %v2377_v35 = vpop.f32.mrb[25].mxu1  ;;  %v2383_v36 = vpop.f32.mrb[33].mxu0  ;;  %v1550_v37 = vadd.f32 %v1549_v33, %v52_v62 }
 0x9d2   :  { %1567 = vmax.xlane.f32.xlu1 %v1566_v3  ;;  %v1505_v4 = vpop.f32.mrb[26].mxu1  ;;  %v1552_v9 = vpop.f32.mrb[34].mxu0 }
 0x9d3   :  { %v1506_v38 = vadd.f32 %v1505_v4, %v53_v2  ;;  %v2378_v39 = vpop.f32.mrb[27].mxu1  ;;  %v2384_v40 = vpop.f32.mrb[35].mxu0  ;;  %v1569_v41 = vsel %vm1556_vm5, %v1503_v34, -inf  ;;  %v1553_v42 = vadd.f32 %v1552_v9, %v53_v2  ;;  %v1575_v44 = vsel %vm1556_vm5, %v1550_v37, -inf }
 0x9d4   :  { %1570 = vmax.xlane.f32.xlu0 %v1569_v41 }
 0x9d5   :  { %v1572_v43 = vsel %vm1556_vm5, %v1506_v38, -inf  ;;  %v1578_v45 = vsel %vm1556_vm5, %v1553_v42, -inf }
 0x9d6   :  { %1573 = vmax.xlane.f32.xlu1 %v1572_v43 }
 0x9d8   :  { %1576 = vmax.xlane.f32.xlu0 %v1575_v44 }
 0x9da   :  { %1579 = vmax.xlane.f32.xlu1 %v1578_v45 }
 0x9eb   :  { %1323 = vrot.lane.b32.xlu1 %v2884_v24, %s2621_s29 }
 0x9ee   :  { %2498 = vrot.lane.b32.xlu0 %v2497_v23, %s2621_s29 }
 0xa59   :  { %v1559_v46 = vpop.xlane.xlu0 %1558 }
 0xa5a   :  { %v1581_v12 = vsub.f32 %v1409_v5, %v1559_v46 }
 0xa5b   :  { %v1562_v15 = vpop.xlane.xlu1 %1561 }
 0xa5c   :  { %v1589_v17 = vmul.f32 1.442695, %v1581_v12  ;;  %v1582_v47 = vsub.f32 %v1412_v20, %v1562_v15 }
 0xa5d   :  { %v1565_v48 = vpop.xlane.xlu0 %1564 }
 0xa5e   :  { %2554 = vpow2.f32 %v1589_v17  ;;  %v1591_v49 = vmul.f32 1.442695, %v1582_v47  ;;  %v1583_v50 = vsub.f32 %v1456_v19, %v1565_v48 }
 0xa5f   :  { %v1568_v51 = vpop.xlane.xlu1 %1567 }
 0xa60   :  { %2556 = vpow2.f32 %v1591_v49  ;;  %v1593_v52 = vmul.f32 1.442695, %v1583_v50  ;;  %v1584_v53 = vsub.f32 %v1459_v29, %v1568_v51 }
 0xa61   :  { %v1571_v54 = vpop.xlane.xlu0 %1570 }
 0xa62   :  { %2558 = vpow2.f32 %v1593_v52  ;;  %v1595_v24 = vmul.f32 1.442695, %v1584_v53  ;;  %v1585_v55 = vsub.f32 %v1503_v34, %v1571_v54 }
 0xa63   :  { %v1574_v56 = vpop.xlane.xlu1 %1573 }
 0xa64   :  { %2560 = vpow2.f32 %v1595_v24  ;;  %v1597_v18 = vmul.f32 1.442695, %v1585_v55  ;;  %v1586_v22 = vsub.f32 %v1506_v38, %v1574_v56 }
 0xa65   :  { %v1577_v23 = vpop.xlane.xlu0 %1576 }
 0xa66   :  { %2562 = vpow2.f32 %v1597_v18  ;;  %v1599_v57 = vmul.f32 1.442695, %v1586_v22  ;;  %v1587_v58 = vsub.f32 %v1550_v37, %v1577_v23 }
 0xa67   :  { %v1580_v59 = vpop.xlane.xlu1 %1579 }
 0xa68   :  { %v2555_v61 = vpop.eup %2554  ;;  %2564 = vpow2.f32 %v1599_v57  ;;  %v1601_v62 = vmul.f32 1.442695, %v1587_v58  ;;  %v1588_v63 = vsub.f32 %v1553_v42, %v1580_v59 }
 0xa69   :  { %v1605_v0 = vsel %vm1556_vm5, %v2555_v61, 0.0  ;;  %v2499_v33 = vpop.permute.xlu0 %2498 }
 0xa6a   :  { %v2557_v2 = vpop.eup %2556  ;;  %2566 = vpow2.f32 %v1601_v62  ;;  %v1603_v5 = vmul.f32 1.442695, %v1588_v63  ;;  %1606 = vadd.xlane.f32.xlu1 %v1605_v0  ;;  %v2500_v34 = vunpack.i.l.bf16 %v2499_v33  ;;  %v2501_v35 = vunpack.i.h.bf16 %v2499_v33 }
 0xa6b   :  { %v1608_v11 = vsel %vm1556_vm5, %v2557_v2, 0.0  ;;  %v1324_v36 = vpop.permute.xlu1 %1323 }
 0xa6c   :  { %v2559_v8 = vpop.eup %2558  ;;  %2568 = vpow2.f32 %v1603_v5  ;;  %1609 = vadd.xlane.f32.xlu0 %v1608_v11 }
 0xa6d   :  { %v1611_v16 = vsel %vm1556_vm5, %v2559_v8, 0.0 }
 0xa6e   :  { %v2561_v14 = vpop.eup %2560 }
 0xa6f   :  { %v1614_v19 = vsel %vm1556_vm5, %v2561_v14, 0.0 }
 0xa70   :  { %v2563_v20 = vpop.eup %2562  ;;  %1612 = vadd.xlane.f32.xlu0 %v1611_v16  ;;  %1615 = vadd.xlane.f32.xlu1 %v1614_v19  ;;  %v2511_v19 = vld [vmem:[%s3049_s6 + $0x8] sm:$0xff]  }
 0xa71   :  { %v1617_v27 = vsel %vm1556_vm5, %v2563_v20, 0.0 }
 0xa72   :  { %v2565_v26 = vpop.eup %2564 }
 0xa73   :  { %v1620_v28 = vsel %vm1556_vm5, %v2565_v26, 0.0 }
 0xa74   :  { %v2567_v29 = vpop.eup %2566  ;;  %1618 = vadd.xlane.f32.xlu0 %v1617_v27  ;;  %1621 = vadd.xlane.f32.xlu1 %v1620_v28 }
 0xa75   :  { %v1623_v31 = vsel %vm1556_vm5, %v2567_v29, 0.0 }
 0xa76   :  { %v2569_v30 = vpop.eup %2568 }
 0xa77   :  { %v1626_v32 = vsel %vm1556_vm5, %v2569_v30, 0.0 }
 0xa78   :  { %1624 = vadd.xlane.f32.xlu0 %v1623_v31  ;;  %1627 = vadd.xlane.f32.xlu1 %v1626_v32 }
 0xaa5   :  { %1328 = vxpose.xlu0.b32.start [1/3] (short) (narrow) %v2500_v34, 32 }
 0xaa9   :  { %1329 = vxpose.xlu0.b32.cont [2/3] (short) (narrow) %v2501_v35, 32 }
 0xaad   :  { %1330 = vxpose.xlu0.b32.end [3/3] (short) (narrow) %v1324_v36, 32 }
 0xaf7   :  { %v1607_v3 = vpop.xlane.xlu1 %1606 }
 0xaf8   :  { %2570 = vrcp.f32 %v1607_v3 }
 0xaf9   :  { %v1610_v4 = vpop.xlane.xlu0 %1609 }
 0xafa   :  { %2572 = vrcp.f32 %v1610_v4 }
 0xafd   :  { %v1613_v9 = vpop.xlane.xlu0 %1612  ;;  %v1616_v37 = vpop.xlane.xlu1 %1615 }
 0xafe   :  { %2574 = vrcp.f32 %v1613_v9 }
 0xaff   :  { %2576 = vrcp.f32 %v1616_v37 }
 0xb01   :  { %v1619_v17 = vpop.xlane.xlu0 %1618  ;;  %v1622_v47 = vpop.xlane.xlu1 %1621 }
 0xb02   :  { %v2571_v38 = vpop.eup %2570  ;;  %2578 = vrcp.f32 %v1619_v17 }
 0xb03   :  { %v1637_v40 = vmul.f32 %v2571_v38, %v2555_v61  ;;  %2580 = vrcp.f32 %v1622_v47 }
 0xb04   :  { %v2573_v39 = vpop.eup %2572 }
 0xb05   :  { %v1638_v41 = vmul.f32 %v2573_v39, %v2557_v2  ;;  %v1625_v49 = vpop.xlane.xlu0 %1624  ;;  %v1628_v50 = vpop.xlane.xlu1 %1627  ;;  %v1872_v39 = vsub.s32 4, %v2720_v7 }
 0xb06   :  { %2582 = vrcp.f32 %v1625_v49 }
 0xb07   :  { %v1649_v42 = vpack.c.bf16 %v1638_v41, %v1637_v40  ;;  %2584 = vrcp.f32 %v1628_v50  ;;  %v2975_v40 = vld [vmem:[%s3052_s9] sm:$0xff] }
 0xb08   :  { %v2575_v43 = vpop.eup %2574  ;;  %v1873_v41 = vrot.slane %v2975_v40, %v1872_v39 }
 0xb09   :  { %v2577_v44 = vpop.eup %2576  ;;  %v1657_v45 = vsel %vm1556_vm5, %v1649_v42, 0  ;;  %v1639_v46 = vmul.f32 %v2575_v43, %v2559_v8  ;;  %v2510_v8 = vld [vmem:[%s3049_s6] sm:$0xff]  }
 0xb0a   :  { %2386 = vmatpush3.bf16.xpose.msra.mxu1 %v1657_v45  ;;  %v1640_v12 = vmul.f32 %v2577_v44, %v2561_v14 }
 0xb0b   :  { %2397 = vmatprep.subr.bf16.mxu1 %v2619_v1 }
 0xb0c   :  { %v1650_v15 = vpack.c.bf16 %v1640_v12, %v1639_v46  ;;  %v2579_v51 = vpop.eup %2578 }
 0xb0d   :  { %v2581_v52 = vpop.eup %2580  ;;  %v1641_v54 = vmul.f32 %v2579_v51, %v2563_v20 }
 0xb0e   :  { %v1703_v48 = vsel %vm1556_vm5, %v1650_v15, 0  ;;  %v1642_v24 = vmul.f32 %v2581_v52, %v2565_v26 }
 0xb0f   :  { %2392 = vmatpush3.bf16.xpose.msra.mxu0 %v1703_v48 }
 0xb10   :  { %2403 = vmatprep.subr.bf16.mxu0 %v2619_v1  ;;  %v2583_v53 = vpop.eup %2582  ;;  %v1651_v56 = vpack.c.bf16 %v1642_v24, %v1641_v54  ;;  %v2515_v54 = vld [vmem:[%s3051_s8 + $0x8] sm:$0xff]  }
 0xb11   :  { %v2585_v55 = vpop.eup %2584  ;;  %v1643_v18 = vmul.f32 %v2583_v53, %v2567_v29  ;;  %v2514_v53 = vld [vmem:[%s3051_s8] sm:$0xff]  }
 0xb12   :  { %v1644_v22 = vmul.f32 %v2585_v55, %v2569_v30  ;;  %v1749_v58 = vsel %vm1556_vm5, %v1651_v56, 0 }
 0xb14   :  { %v1652_v59 = vpack.c.bf16 %v1644_v22, %v1643_v18 }
 0xb16   :  { %v1795_v63 = vsel %vm1556_vm5, %v1652_v59, 0 }
 0xb25   :  { %v1344_v23 = vpop.trf.xlu0 }
 0xb26   :  { %v1645_v57 = vpack.c.bf16 %v1344_v23, %v1344_v23 }
 0xb28   :  { %2388 = vmatmul.mubr.msk.bf16.vlgmr.msra.gmra.mrb[28].mxu1 %vm1556_vm5, %v1645_v57 }
 0xb29   :  { %2398 = vmatpush3.bf16.xpose.msra.mxu1 %v1749_v58  ;;  %v1345_v61 = vpop.trf.xlu0  ;;  %2399 = vmatprep.mubr.msk.bf16.mxu1 %vm2620_vm0, %v2619_v1 }
 0xb2a   :  { %v1646_v62 = vpack.c.bf16 %v1345_v61, %v1345_v61  ;;  %2409 = vmatprep.subr.bf16.mxu1 %v2619_v1 }
 0xb2c   :  { %2394 = vmatmul.mubr.msk.bf16.vlgmr.msra.gmra.mrb[36].mxu0 %vm1556_vm5, %v1646_v62 }
 0xb2d   :  { %2404 = vmatpush3.bf16.xpose.msra.mxu0 %v1795_v63  ;;  %v1346_v0 = vpop.trf.xlu0  ;;  %2405 = vmatprep.mubr.msk.bf16.mxu0 %vm2620_vm0, %v2619_v1 }
 0xb2e   :  { %v1647_v2 = vpack.c.bf16 %v1346_v0, %v1346_v0  ;;  %2417 = vmatprep.subr.bf16.mxu0 %v2619_v1 }
 0xb30   :  { %2400 = vmatmul.mubr.msk.bf16.vlgmr.msra.gmra.mrb[32].mxu1 %vm1556_vm5, %v1647_v2 }
 0xb31   :  { %v1347_v5 = vpop.trf.xlu0  ;;  %2413 = vmatprep.mubr.msk.bf16.mxu1 %vm2620_vm0, %v2619_v1  ;;  %2410 = vmatpush3.bf16.msra.mxu1 %v2510_v8 }
 0xb32   :  { %v1648_v11 = vpack.c.bf16 %v1347_v5, %v1347_v5  ;;  %2411 = vmatprep.subr.bf16.mxu1 %v2619_v1  ;;  %v1965_v5 = vrot.slane %v2859_v60, %v986_v25  ;;  %v2516_v25 = vld [vmem:[%s3051_s8 + $0x10] sm:$0xff]  }
 0xb34   :  { %2406 = vmatmul.mubr.msk.bf16.vlgmr.msra.gmra.mrb[40].mxu0 %vm1556_vm5, %v1648_v11 }
 0xb35   :  { %2421 = vmatprep.mubr.msk.bf16.mxu0 %vm2620_vm0, %v2619_v1  ;;  %2412 = vmatpush3.bf16.msra.mxu1 %v2511_v19 }
 0xb36   :  { %2425 = vmatprep.subr.bf16.mxu1 %v2619_v1 }
 0xbfb   :  { %v1693_v14 = vpop.f32.mrb[28].mxu1 }
 0xbfc   :  { %1837 = vxpose.xlu1.b32.start [1/4] (short) (narrow) %v1693_v14, 16  ;;  %v2389_v16 = vpop.f32.mrb[29].mxu1 }
 0xbfd   :  { %v1696_v20 = vpop.f32.mrb[30].mxu1 }
 0xbfe   :  { %v2390_v26 = vpop.f32.mrb[31].mxu1  ;;  %v1971_v20 = vrot.slane %v2859_v60, %v1052_v13  ;;  %v1981_v13 = vsub.s32 5, %v2720_v7 }
 0xbff   :  { %v1739_v27 = vpop.f32.mrb[36].mxu0 }
 0xc00   :  { %1838 = vxpose.xlu1.b32.cont [2/4] (short) (narrow) %v1739_v27, 16  ;;  %v2395_v28 = vpop.f32.mrb[37].mxu0 }
 0xc01   :  { %v1742_v29 = vpop.f32.mrb[38].mxu0 }
 0xc02   :  { %v2396_v30 = vpop.f32.mrb[39].mxu0 }
 0xc03   :  { %v1785_v31 = vpop.f32.mrb[32].mxu1 }
 0xc04   :  { %1839 = vxpose.xlu1.b32.cont [3/4] (short) (narrow) %v1785_v31, 16  ;;  %v2401_v32 = vpop.f32.mrb[33].mxu1 }
 0xc05   :  { %v1788_v33 = vpop.f32.mrb[34].mxu1  ;;  %v2517_v32 = vld [vmem:[%s3051_s8 + $0x18] sm:$0xff]   ;;  %s2623_s8 = smov [#allocation2]  }
 0xc06   :  { %v2402_v34 = vpop.f32.mrb[35].mxu1  ;;  %v1982_v33 = vrot.slane %v2975_v40, %v1981_v13  ;;  %s2174_s28 = sshll.u32 %s2623_s8, 4  ;;  %s2175_s28 = int_to_ptr.vmem [resolvable:$true] %s2174_s28 }
 0xc07   :  { %v1831_v35 = vpop.f32.mrb[40].mxu0  ;;  %s2595_s0 = scalar_lea.vmem %s2175_s28, 256  ;;  %p2600_p1 = scmp.lt.s32.totalorder %s2175_s28, %s2175_s28 }
 0xc08   :  { %1840 = vxpose.xlu1.b32.end [4/4] (short) (narrow) %v1831_v35, 16  ;;  %v2407_v36 = vpop.f32.mrb[41].mxu0  ;;  %p2596_p0 = scmp.ne.s32.totalorder %s2175_s28, %s2595_s0  ;;  %p2601_p2 = scmp.lt.s32.totalorder %s2595_s0, %s2595_s0 }
 0xc09   :  { %v1834_v3 = vpop.f32.mrb[42].mxu0 }
 0xc0a   :  { %v2408_v4 = vpop.f32.mrb[43].mxu0  ;;  %p2602_p3 = por %p2601_p2, %p2600_p1 }
 0xc0c   :  { %p2603_p4 = pnand %p2602_p3, %p2596_p0 }
 0xc7c   :  { %v1853_v9 = vpop.trf.xlu1 }
 0xc80   :  { %v1854_v37 = vpop.trf.xlu1 }
 0xc81   :  { %v1869_v38 = vpack.c.bf16 %v1854_v37, %v1853_v9 }
 0xc83   :  { %2414 = vmatmul.mubr.msk.bf16.vlgmr.msra.gmra.mrb[36].mxu1 %vm75_vm1, %v1869_v38 }
 0xc84   :  { %2433 = vmatprep.mubr.msk.bf16.mxu1 %vm2620_vm0, %v2619_v1  ;;  %2426 = vmatpush3.bf16.msra.mxu1 %v2514_v53 }
 0xc85   :  { %2427 = vmatprep.subr.bf16.mxu1 %v2619_v1 }
 0xc88   :  { %2428 = vmatpush3.bf16.msra.mxu1 %v2515_v54 }
 0xc89   :  { %2429 = vmatprep.subr.bf16.mxu1 %v2619_v1 }
 0xc8c   :  { %2430 = vmatpush3.bf16.msra.mxu1 %v2516_v25 }
 0xc8d   :  { %2431 = vmatprep.subr.bf16.mxu1 %v2619_v1 }
 0xc90   :  { %2432 = vmatpush3.bf16.msra.mxu1 %v2517_v32 }
 0xd56   :  { %v1923_v42 = vpop.f32.mrb[36].mxu1 }
 0xd57   :  { %v1924_v43 = vadd.f32 %v1923_v42, %v1873_v41  ;;  %v2415_v44 = vpop.f32.mrb[37].mxu1 }
 0xd58   :  { %v1926_v45 = vpop.f32.mrb[38].mxu1 }
 0xd59   :  { %v1930_v46 = vadd.f32 %v1924_v43, %v2864_v6  ;;  %v1927_v12 = vadd.f32 %v1926_v45, %v1873_v41  ;;  %v2416_v15 = vpop.f32.mrb[39].mxu1  ;;  %v2512_v6 = vld [vmem:[%s3050_s7] sm:$0xff]  }
 0xd5a   :  { %2418 = vmatpush3.bf16.msra.mxu0 %v2512_v6 }
 0xd5b   :  { %v1931_v17 = vadd.f32 %v1927_v12, %v2866_v10  ;;  %v1932_v47 = vsel %vm75_vm1, %v1930_v46, 0.0  ;;  %v1940_v48 = vmul.f32 %v1930_v46, %v1930_v46  ;;  %v2513_v10 = vld [vmem:[%s3050_s7 + $0x8] sm:$0xff]   ;;  %2419 = vmatprep.subr.bf16.mxu0 %v2619_v1  ;;  %v2052_v1 = vsub.s32 6, %v2720_v7 }
 0xd5c   :  { %1933 = vadd.xlane.f32.xlu0 %v1932_v47 }
 0xd5d   :  { %v1935_v49 = vsel %vm75_vm1, %v1931_v17, 0.0  ;;  %v1941_v50 = vmul.f32 %v1931_v17, %v1931_v17  ;;  %v1942_v51 = vsel %vm75_vm1, %v1940_v48, 0.0  ;;  %v2053_v42 = vrot.slane %v2975_v40, %v2052_v1 }
 0xd5e   :  { %1936 = vadd.xlane.f32.xlu1 %v1935_v49  ;;  %2420 = vmatpush3.bf16.msra.mxu0 %v2513_v10 }
 0xd5f   :  { %v1945_v52 = vsel %vm75_vm1, %v1941_v50, 0.0 }
 0xd60   :  { %1943 = vadd.xlane.f32.xlu0 %v1942_v51 }
 0xd62   :  { %1946 = vadd.xlane.f32.xlu1 %v1945_v52 }
 0xde9   :  { %v1934_v24 = vpop.xlane.xlu0 %1933 }
 0xdea   :  { %v1938_v55 = vmul.f32 0.03125, %v1934_v24 }
 0xdeb   :  { %v1937_v56 = vpop.xlane.xlu1 %1936 }
 0xdec   :  { %v1939_v18 = vmul.f32 0.03125, %v1937_v56  ;;  %v1950_v23 = vmul.f32 %v1938_v55, %v1938_v55  ;;  %v1958_v11 = vsub.f32 %v1930_v46, %v1938_v55 }
 0xded   :  { %v1944_v22 = vpop.xlane.xlu0 %1943 }
 0xdee   :  { %v1948_v57 = vmul.f32 0.03125, %v1944_v22  ;;  %v1951_v59 = vmul.f32 %v1939_v18, %v1939_v18  ;;  %v1959_v14 = vsub.f32 %v1931_v17, %v1939_v18 }
 0xdef   :  { %v1947_v58 = vpop.xlane.xlu1 %1946 }
 0xdf0   :  { %v1952_v61 = vsub.f32 %v1948_v57, %v1950_v23  ;;  %v1949_v62 = vmul.f32 0.03125, %v1947_v58 }
 0xdf2   :  { %v1954_v63 = vadd.f32 1e-05, %v1952_v61  ;;  %v1953_v0 = vsub.f32 %v1949_v62, %v1951_v59  ;;  %v2158_v62 = vrot.slane %v2859_v60, %v876_v21 }
 0xdf4   :  { %2586 = vrsqrt.f32 %v1954_v63  ;;  %v1955_v2 = vadd.f32 1e-05, %v1953_v0 }
 0xdf6   :  { %2588 = vrsqrt.f32 %v1955_v2  ;;  %v2164_v2 = vrot.slane %v2859_v60, %v1872_v39 }
 0xdfe   :  { %v2587_v8 = vpop.eup %2586 }
 0xdff   :  { %v1960_v16 = vmul.f32 %v2587_v8, %v1958_v11 }
 0xe00   :  { %v2589_v19 = vpop.eup %2588 }
 0xe01   :  { %v1961_v26 = vmul.f32 %v2589_v19, %v1959_v14  ;;  %v1966_v27 = vmul.f32 %v1965_v5, %v1960_v16 }
 0xe03   :  { %v1967_v28 = vmul.f32 %v1965_v5, %v1961_v26  ;;  %v1972_v29 = vadd.f32 %v1971_v20, %v1966_v27 }
 0xe05   :  { %v1973_v30 = vadd.f32 %v1971_v20, %v1967_v28 }
 0xe07   :  { %v1974_v31 = vpack.c.bf16 %v1973_v30, %v1972_v29 }
 0xe09   :  { %2422 = vmatmul.mubr.msk.bf16.vlgmr.msra.gmra.mrb[44].mxu0 %vm75_vm1, %v1974_v31 }
 0xedc   :  { %v2032_v34 = vpop.f32.mrb[44].mxu0 }
 0xedd   :  { %v2033_v35 = vadd.f32 %v2032_v34, %v1982_v33  ;;  %v2423_v36 = vpop.f32.mrb[45].mxu0 }
 0xede   :  { %v2035_v3 = vpop.f32.mrb[46].mxu0 }
 0xedf   :  { %v2036_v4 = vadd.f32 %v2035_v3, %v1982_v33  ;;  %v2424_v9 = vpop.f32.mrb[47].mxu0  ;;  %v2039_v37 = vmax.f32 %v2033_v35, 0.0 }
 0xee1   :  { %v2040_v38 = vmax.f32 %v2036_v4, 0.0 }
 0xee3   :  { %v2041_v41 = vpack.c.bf16 %v2040_v38, %v2039_v37 }
 0xee5   :  { %2434 = vmatmul.mubr.msk.bf16.vlgmr.msra.gmra.mrb[40].mxu1 %vm2078_vm6, %v2041_v41 }
 0xfb8   :  { %v2116_v43 = vpop.f32.mrb[40].mxu1 }
 0xfb9   :  { %v2117_v44 = vadd.f32 %v2116_v43, %v2053_v42  ;;  %v2435_v45 = vpop.f32.mrb[41].mxu1 }
 0xfba   :  { %v2119_v46 = vpop.f32.mrb[42].mxu1 }
 0xfbb   :  { %v2123_v12 = vadd.f32 %v2117_v44, %v1972_v29  ;;  %v2120_v15 = vadd.f32 %v2119_v46, %v2053_v42  ;;  %v2436_v17 = vpop.f32.mrb[43].mxu1 }
 0xfbd   :  { %v2124_v47 = vadd.f32 %v2120_v15, %v1973_v30  ;;  %v2125_v48 = vsel %vm75_vm1, %v2123_v12, 0.0  ;;  %v2133_v49 = vmul.f32 %v2123_v12, %v2123_v12 }
 0xfbe   :  { %2126 = vadd.xlane.f32.xlu0 %v2125_v48 }
 0xfbf   :  { %v2128_v50 = vsel %vm75_vm1, %v2124_v47, 0.0  ;;  %v2134_v51 = vmul.f32 %v2124_v47, %v2124_v47  ;;  %v2135_v52 = vsel %vm75_vm1, %v2133_v49, 0.0 }
 0xfc0   :  { %2129 = vadd.xlane.f32.xlu1 %v2128_v50 }
 0xfc1   :  { %v2138_v40 = vsel %vm75_vm1, %v2134_v51, 0.0 }
 0xfc2   :  { %2136 = vadd.xlane.f32.xlu0 %v2135_v52 }
 0xfc4   :  { %2139 = vadd.xlane.f32.xlu1 %v2138_v40 }
0x104b   :  { %v2127_v6 = vpop.xlane.xlu0 %2126 }
0x104c   :  { %v2131_v10 = vmul.f32 0.03125, %v2127_v6 }
0x104d   :  { %v2130_v53 = vpop.xlane.xlu1 %2129 }
0x104e   :  { %v2132_v54 = vmul.f32 0.03125, %v2130_v53  ;;  %v2143_v55 = vmul.f32 %v2131_v10, %v2131_v10  ;;  %v2151_v63 = vsub.f32 %v2123_v12, %v2131_v10 }
0x104f   :  { %v2137_v24 = vpop.xlane.xlu0 %2136 }
0x1050   :  { %v2141_v56 = vmul.f32 0.03125, %v2137_v24  ;;  %v2144_v22 = vmul.f32 %v2132_v54, %v2132_v54  ;;  %v2152_v5 = vsub.f32 %v2124_v47, %v2132_v54 }
0x1051   :  { %v2140_v18 = vpop.xlane.xlu1 %2139 }
0x1052   :  { %v2145_v23 = vsub.f32 %v2141_v56, %v2143_v55  ;;  %v2142_v57 = vmul.f32 0.03125, %v2140_v18 }
0x1054   :  { %v2147_v58 = vadd.f32 1e-05, %v2145_v23  ;;  %v2146_v59 = vsub.f32 %v2142_v57, %v2144_v22 }
0x1056   :  { %2590 = vrsqrt.f32 %v2147_v58  ;;  %v2148_v61 = vadd.f32 1e-05, %v2146_v59 }
0x1058   :  { %2592 = vrsqrt.f32 %v2148_v61 }
0x1060   :  { %v2591_v0 = vpop.eup %2590 }
0x1061   :  { %v2153_v11 = vmul.f32 %v2591_v0, %v2151_v63 }
0x1062   :  { %v2593_v8 = vpop.eup %2592 }
0x1063   :  { %v2154_v14 = vmul.f32 %v2593_v8, %v2152_v5  ;;  %v2159_v16 = vmul.f32 %v2158_v62, %v2153_v11 }
0x1065   :  { %v2160_v19 = vmul.f32 %v2158_v62, %v2154_v14  ;;  %v2165_v20 = vadd.f32 %v2164_v2, %v2159_v16 }
0x1067   :  { %v2166_v26 = vadd.f32 %v2164_v2, %v2160_v19  ;;  %2167 = vst.msk [vmem:[#allocation2] sm:$0xff] %vm75_vm1, %v2165_v20 }
0x1069   :  { %2168 = vst.msk [vmem:[#allocation2 + $0x8] sm:$0xff] %vm75_vm1, %v2166_v26 }
0x106a   :  { %2606 = shalt.err (!%p2603_p4)
}
0x106b   :  { %s2607_s30 = scalar_lea.hbm %s3055_s12, 256 }
0x106c   :  { %p2608_p5 = scmp.ne.s32.totalorder %s3055_s12, %s2607_s30  ;;  %p2611_p6 = scmp.lt.u32.totalorder %s2607_s30, %s3055_s12 }
0x106e   :  { %p2613_p7 = pnand %p2611_p6, %p2608_p5 }
0x1070   :  { %2616 = shalt.err (!%p2613_p7)
}
0x1071   :  { %s2624_s15 = smov 128   ;;  %s2625_s10 = smov 8  }
0x1072   :  { %2180 = dma.vmem_to_hbm [thread:$0]  %s2175_s28, 256, %s3055_s12, [#allocation3], %s2624_s15, %s2624_s15, %s2625_s10  }
0x1073   :  { %2617 = dma.done.wait [#allocation3], 256  }
0x1074   :  { %2618 = vsyncadd [#allocation3], 4294967040 }
0x1075   :  { %2184 = vsyncpa [#allocation3], 1 }

</bundles_post_ra>
